<compile_context>
chip_gen: v7x
topology: tpu7x:2x2x1
jax: 0.10.0
libtpu: 0.0.40
codegen_flags: <defaults>
</compile_context>

<pallas_src>
import functools

import jax
import jax.numpy as jnp
from jax import lax
from jax.experimental import pallas as pl
from jax.experimental.pallas import tpu as pltpu


# ---------------------------------------------------------------------------
# VMEM budget per generation: ~3/4 of physical (v5e/v6e ~96 MiB, v7x 48 MiB),
# capped at 100 MiB, conservative 48 MiB fallback if the query fails.
# ---------------------------------------------------------------------------
_VMEM_LIMIT_CACHE = None


def _vmem_limit_bytes():
    global _VMEM_LIMIT_CACHE
    if _VMEM_LIMIT_CACHE is None:
        cap = 64 * 1024 * 1024
        try:
            cap = int(getattr(pltpu.get_tpu_info(), "vmem_capacity_bytes", cap))
        except Exception:
            pass
        _VMEM_LIMIT_CACHE = min((cap * 3) // 4, 100 * 1024 * 1024)
    return _VMEM_LIMIT_CACHE


# ---------------------------------------------------------------------------
# Single-buffering for grid-invariant weights, feature-probed once
# (compile-only) so unsupported jax versions fall back cleanly.
# ---------------------------------------------------------------------------
def _probe_buffered_pipeline_mode():
    try:
        mode = pl.Buffered(1)

        def _k(a_ref, o_ref):
            o_ref[...] = a_ref[...] + 1.0

        fn = pl.pallas_call(
            _k,
            grid=(2,),
            in_specs=[pl.BlockSpec((8, 128), lambda i: (0, 0), pipeline_mode=mode)],
            out_specs=pl.BlockSpec((8, 128), lambda i: (i, 0)),
            out_shape=jax.ShapeDtypeStruct((16, 128), jnp.float32),
        )
        jax.jit(fn).lower(jax.ShapeDtypeStruct((8, 128), jnp.float32)).compile()
        return mode
    except Exception:
        return None


_WEIGHT_PIPELINE_MODE = _probe_buffered_pipeline_mode()


def _const_spec(shape):
    """Full-array BlockSpec, constant index map (VMEM-resident weight), single-buffered."""
    nd = len(shape)
    idx = lambda *_: (0,) * nd
    if _WEIGHT_PIPELINE_MODE is not None:
        return pl.BlockSpec(shape, idx, pipeline_mode=_WEIGHT_PIPELINE_MODE)
    return pl.BlockSpec(shape, idx)


def _round_up(x, m):
    return ((x + m - 1) // m) * m


def _layernorm(x, g, b, eps=1e-5):
    # x: (T, C); g, b: (1, C); all f32
    mu = jnp.mean(x, axis=-1, keepdims=True)
    var = jnp.mean((x - mu) ** 2, axis=-1, keepdims=True)
    return (x - mu) * lax.rsqrt(var + eps) * g + b


# ---------------------------------------------------------------------------
# One transformer Block per grid step (grid over B).
# ---------------------------------------------------------------------------
def transformer_block_kernel(n_head, head_size, window_size,
                             x_ref, ln1_g, ln1_b, w_qkv, wp, bp,
                             ln2_g, ln2_b, w1, b1, w2, b2,
                             out_ref, maps_ref):
    T = x_ref.shape[1]
    C = x_ref.shape[2]
    H, hs = n_head, head_size
    x = x_ref[0]                                            # (T, C) f32

    # --- self attention on ln1(x) ---
    xn = _layernorm(x, ln1_g[...], ln1_b[...])

    # fused QKV: one wide bf16 MXU op with f32 accumulation
    qkv = jnp.dot(xn.astype(jnp.bfloat16), w_qkv[...],
                  preferred_element_type=jnp.float32)       # (T, 3C)
    scale = C ** (-0.5)                                     # reference scales by n_embd^-0.5
    q = (qkv[:, :C] * scale).reshape(T, H, hs).astype(jnp.bfloat16)
    k = qkv[:, C:2 * C].reshape(T, H, hs).astype(jnp.bfloat16)
    v = qkv[:, 2 * C:].reshape(T, H, hs).astype(jnp.bfloat16)

    # fused local-window AND causal mask (diagonal always valid -> row max finite)
    row = lax.broadcasted_iota(jnp.int32, (T, T), 0)
    col = lax.broadcasted_iota(jnp.int32, (T, T), 1)
    mask = jnp.logical_and(row - col <= window_size, col <= row)

    # batched QK^T over all heads: (H, T, T), f32 accumulation
    wei = jnp.einsum('qhd,khd->hqk', q, k, preferred_element_type=jnp.float32)
    wei = jnp.where(mask[None, :, :], wei, -1e30)
    wei = wei - jnp.max(wei, axis=-1, keepdims=True)
    e = jnp.exp(wei)
    p = e * pl.reciprocal(jnp.sum(e, axis=-1, keepdims=True), approx=False)

    # one contiguous per-layer store, already in the torch (H, B, T, T) layout
    maps_ref[...] = p.astype(maps_ref.dtype).reshape(maps_ref.shape)

    # batched PV -> (T, H, hs) -> contiguous merge to (T, C)
    o = jnp.einsum('hqk,khd->qhd', p.astype(jnp.bfloat16), v,
                   preferred_element_type=jnp.float32)
    sa = jnp.dot(o.reshape(T, C).astype(jnp.bfloat16), wp[...],
                 preferred_element_type=jnp.float32) + bp[...]
    x = x + sa                                              # residual 1

    # --- feed forward on ln2(x) ---
    xn2 = _layernorm(x, ln2_g[...], ln2_b[...]).astype(jnp.bfloat16)
    h1 = jnp.maximum(
        jnp.dot(xn2, w1[...], preferred_element_type=jnp.float32) + b1[...], 0.0)
    ff = jnp.dot(h1.astype(jnp.bfloat16), w2[...],
                 preferred_element_type=jnp.float32) + b2[...]
    out_ref[0] = x + ff                                     # residual 2


def run_block(x, p, n_head, head_size, window_size, maps_dtype):
    B, T, C = x.shape
    kernel = functools.partial(transformer_block_kernel, n_head, head_size, window_size)
    weights = (p["ln1_g"], p["ln1_b"], p["w_qkv"], p["wp"], p["bp"],
               p["ln2_g"], p["ln2_b"], p["w1"], p["b1"], p["w2"], p["b2"])
    in_specs = [pl.BlockSpec((1, T, C), lambda b: (b, 0, 0))] + \
               [_const_spec(w.shape) for w in weights]
    out_specs = (pl.BlockSpec((1, T, C), lambda b: (b, 0, 0)),
                 pl.BlockSpec((n_head, 1, T, T), lambda b: (0, b, 0, 0)))
    out_shape = (jax.ShapeDtypeStruct((B, T, C), jnp.float32),
                 jax.ShapeDtypeStruct((n_head, B, T, T), maps_dtype))
    return pl.pallas_call(
        kernel,
        grid=(B,),
        in_specs=in_specs,
        out_specs=out_specs,
        out_shape=out_shape,
        compiler_params=pltpu.CompilerParams(
            dimension_semantics=("parallel",),
            vmem_limit_bytes=_vmem_limit_bytes()),
    )(x, *weights)


# ---------------------------------------------------------------------------
# Final LayerNorm (hoisted out of the lm_head so it runs once per (B, T)).
# ---------------------------------------------------------------------------
def final_ln_kernel(x_ref, g_ref, b_ref, out_ref):
    out_ref[0] = _layernorm(x_ref[0], g_ref[...], b_ref[...]).astype(out_ref.dtype)


def run_final_ln(x, g, b):
    B, T, C = x.shape
    return pl.pallas_call(
        final_ln_kernel,
        grid=(B,),
        in_specs=[pl.BlockSpec((1, T, C), lambda i: (i, 0, 0)),
                  _const_spec(g.shape), _const_spec(b.shape)],
        out_specs=pl.BlockSpec((1, T, C), lambda i: (i, 0, 0)),
        out_shape=jax.ShapeDtypeStruct((B, T, C), jnp.bfloat16),
        compiler_params=pltpu.CompilerParams(
            dimension_semantics=("parallel",),
            vmem_limit_bytes=_vmem_limit_bytes()),
    )(x, g, b)


# ---------------------------------------------------------------------------
# lm_head: vocab tiled (padded to 128-aligned tiles), grid (V_tiles, B) with B
# innermost so each weight tile is streamed from HBM once per vocab tile.
# ---------------------------------------------------------------------------
def lm_head_kernel(x_ref, w_ref, b_ref, out_ref):
    out_ref[0] = jnp.dot(x_ref[0], w_ref[...],
                         preferred_element_type=jnp.float32) + b_ref[...]


def run_lm_head(xn, w, b):
    B, T, C = xn.shape
    V = w.shape[1]
    tv = min(2048, _round_up(V, 128))
    Vp = _round_up(V, tv)
    w_p = w.astype(jnp.bfloat16)
    b_p = b
    if Vp != V:
        w_p = jnp.pad(w_p, ((0, 0), (0, Vp - V)))
        b_p = jnp.pad(b_p, ((0, 0), (0, Vp - V)))
    nv = Vp // tv
    logits = pl.pallas_call(
        lm_head_kernel,
        grid=(nv, B),   # B innermost -> weight tile index constant across inner axis
        in_specs=[pl.BlockSpec((1, T, C), lambda v, bi: (bi, 0, 0)),
                  pl.BlockSpec((C, tv), lambda v, bi: (0, v)),
                  pl.BlockSpec((1, tv), lambda v, bi: (0, v))],
        out_specs=pl.BlockSpec((1, T, tv), lambda v, bi: (bi, 0, v)),
        out_shape=jax.ShapeDtypeStruct((B, T, Vp), jnp.float32),
        compiler_params=pltpu.CompilerParams(
            dimension_semantics=("parallel", "parallel"),
            vmem_limit_bytes=_vmem_limit_bytes()),
    )(xn, w_p, b_p)
    return logits[:, :, :V] if Vp != V else logits


# ---------------------------------------------------------------------------
# Wrapper (embedding gather, layer loop, loss) -- plain-JAX glue only.
# ---------------------------------------------------------------------------
def _prepare_block_params(p):
    bf = jnp.bfloat16
    return dict(
        ln1_g=p["ln1_g"], ln1_b=p["ln1_b"],
        w_qkv=jnp.concatenate([p["wq"], p["wk"], p["wv"]], axis=1).astype(bf),
        wp=p["wp"].astype(bf), bp=p["bp"],
        ln2_g=p["ln2_g"], ln2_b=p["ln2_b"],
        w1=p["w1"].astype(bf), b1=p["b1"],
        w2=p["w2"].astype(bf), b2=p["b2"],
    )


def decoder2_forward(idx, params, *, n_head, head_size, window_size, block_size,
                     targets=None, maps_dtype=jnp.bfloat16):
    B, T = idx.shape
    tok_emb = params["tok_table"][idx]                      # (B, T, C) gather = glue
    pos_emb = params["pos_table"][jnp.arange(T)]            # (T, C)
    x = (tok_emb + pos_emb[None, :, :]).astype(jnp.float32)

    layer_maps = []
    for blk in params["blocks"]:
        bparams = _prepare_block_params(blk)
        x, maps_l = run_block(x, bparams, n_head, head_size, window_size, maps_dtype)
        layer_maps.append(maps_l)                           # (H, B, T, T)

    xn = run_final_ln(x, params["lnf_g"], params["lnf_b"])  # (B, T, C) bf16
    logits = run_lm_head(xn, params["lm_w"], params["lm_b"])  # (B, T, V) f32

    # torch stacking order is (layer, head, batch); kernels already emit (H, B, T, T)
    maps = jnp.stack(layer_maps, axis=0).reshape(-1, block_size, block_size)

    loss = None
    if targets is not None:
        lg = logits.reshape(B * T, -1)
        tg = targets.reshape(B * T)
        logz = jax.nn.logsumexp(lg, axis=-1)
        nll = logz - jnp.take_along_axis(lg, tg[:, None], axis=1)[:, 0]
        loss = jnp.mean(nll)
    return logits, loss, maps


def init_params(key, vocab_size, n_embd, n_head, n_layer, block_size):
    C = n_embd
    ks = iter(jax.random.split(key, 8 + 16 * n_layer))
    norm = lambda k, shp: (0.02 * jax.random.normal(k, shp)).astype(jnp.float32)
    ones_row = jnp.ones((1, C), jnp.float32)
    zeros_row = jnp.zeros((1, C), jnp.float32)

    blocks = []
    for _ in range(n_layer):
        blocks.append(dict(
            ln1_g=ones_row, ln1_b=zeros_row,
            wq=norm(next(ks), (C, C)), wk=norm(next(ks), (C, C)), wv=norm(next(ks), (C, C)),
            wp=norm(next(ks), (C, C)), bp=norm(next(ks), (1, C)),
            ln2_g=ones_row, ln2_b=zeros_row,
            w1=norm(next(ks), (C, 4 * C)), b1=norm(next(ks), (1, 4 * C)),
            w2=norm(next(ks), (4 * C, C)), b2=norm(next(ks), (1, C)),
        ))
    return dict(
        tok_table=norm(next(ks), (vocab_size, C)),
        pos_table=norm(next(ks), (block_size, C)),
        blocks=blocks,
        lnf_g=ones_row, lnf_b=zeros_row,
        lm_w=norm(next(ks), (C, vocab_size)),
        lm_b=norm(next(ks), (1, vocab_size)),
    )


if __name__ == "__main__":
    # small shapes consistent with Decoder2
    vocab_size, n_embd, n_head, n_layer = 16, 32, 4, 2
    block_size, window_size = 8, 2
    head_size = n_embd // n_head
    B, T = 2, block_size

    key = jax.random.PRNGKey(0)
    k_params, k_idx = jax.random.split(key)
    params = init_params(k_params, vocab_size, n_embd, n_head, n_layer, block_size)
    idx = jax.random.randint(k_idx, (B, T), 0, vocab_size)

    fwd = jax.jit(functools.partial(
        decoder2_forward, n_head=n_head, head_size=head_size,
        window_size=window_size, block_size=block_size))
    logits, loss, maps = fwd(idx, params)

    jax.block_until_ready((logits, maps))
    assert logits.shape == (B, T, vocab_size)
    assert maps.shape == (n_layer * n_head * B, block_size, block_size)
    assert loss is None
    print("KERNEL_OK")
</pallas_src>

<mosaic_0001>
module attributes {stable_mosaic.version = 11 : i64} {
  func.func @transformer_block_kernel(%arg0: i32, %arg1: memref<1x8x32xf32, #tpu.memory_space<vmem>>, %arg2: memref<1x32xf32, #tpu.memory_space<vmem>>, %arg3: memref<1x32xf32, #tpu.memory_space<vmem>>, %arg4: memref<32x96xbf16, #tpu.memory_space<vmem>>, %arg5: memref<32x32xbf16, #tpu.memory_space<vmem>>, %arg6: memref<1x32xf32, #tpu.memory_space<vmem>>, %arg7: memref<1x32xf32, #tpu.memory_space<vmem>>, %arg8: memref<1x32xf32, #tpu.memory_space<vmem>>, %arg9: memref<32x128xbf16, #tpu.memory_space<vmem>>, %arg10: memref<1x128xf32, #tpu.memory_space<vmem>>, %arg11: memref<128x32xbf16, #tpu.memory_space<vmem>>, %arg12: memref<1x32xf32, #tpu.memory_space<vmem>>, %arg13: memref<1x8x32xf32, #tpu.memory_space<vmem>>, %arg14: memref<4x1x8x8xbf16, #tpu.memory_space<vmem>>) attributes {dimension_semantics = [#tpu.dimension_semantics<parallel>], iteration_bounds = array<i64: 2>, scalar_prefetch = 0 : i64, scratch_operands = 0 : i64, tpu.core_type = #tpu.core_type<tc>, window_params = [{transform_indices = @transform_0, window_bounds = array<i64: 1, 8, 32>}, {pipeline_mode = #tpu.pipeline_mode<synchronous>, transform_indices = @transform_1, window_bounds = array<i64: 1, 32>}, {pipeline_mode = #tpu.pipeline_mode<synchronous>, transform_indices = @transform_2, window_bounds = array<i64: 1, 32>}, {pipeline_mode = #tpu.pipeline_mode<synchronous>, transform_indices = @transform_3, window_bounds = array<i64: 32, 96>}, {pipeline_mode = #tpu.pipeline_mode<synchronous>, transform_indices = @transform_4, window_bounds = array<i64: 32, 32>}, {pipeline_mode = #tpu.pipeline_mode<synchronous>, transform_indices = @transform_5, window_bounds = array<i64: 1, 32>}, {pipeline_mode = #tpu.pipeline_mode<synchronous>, transform_indices = @transform_6, window_bounds = array<i64: 1, 32>}, {pipeline_mode = #tpu.pipeline_mode<synchronous>, transform_indices = @transform_7, window_bounds = array<i64: 1, 32>}, {pipeline_mode = #tpu.pipeline_mode<synchronous>, transform_indices = @transform_8, window_bounds = array<i64: 32, 128>}, {pipeline_mode = #tpu.pipeline_mode<synchronous>, transform_indices = @transform_9, window_bounds = array<i64: 1, 128>}, {pipeline_mode = #tpu.pipeline_mode<synchronous>, transform_indices = @transform_10, window_bounds = array<i64: 128, 32>}, {pipeline_mode = #tpu.pipeline_mode<synchronous>, transform_indices = @transform_11, window_bounds = array<i64: 1, 32>}, {transform_indices = @transform_12, window_bounds = array<i64: 1, 8, 32>}, {transform_indices = @transform_13, window_bounds = array<i64: 4, 1, 8, 8>}]} {
    %c0 = arith.constant 0 : index
    %c0_0 = arith.constant 0 : index
    %c0_1 = arith.constant 0 : index
    %0 = vector.load %arg1[%c0, %c0_0, %c0_1] : memref<1x8x32xf32, #tpu.memory_space<vmem>>, vector<1x8x32xf32>
    %1 = vector.shape_cast %0 : vector<1x8x32xf32> to vector<8x32xf32>
    %c0_2 = arith.constant 0 : index
    %c0_3 = arith.constant 0 : index
    %2 = vector.load %arg2[%c0_2, %c0_3] : memref<1x32xf32, #tpu.memory_space<vmem>>, vector<1x32xf32>
    %c0_4 = arith.constant 0 : index
    %c0_5 = arith.constant 0 : index
    %3 = vector.load %arg3[%c0_4, %c0_5] : memref<1x32xf32, #tpu.memory_space<vmem>>, vector<1x32xf32>
    %cst = arith.constant dense<0.000000e+00> : vector<8xf32>
    %4 = vector.multi_reduction <add>, %1, %cst [1] : vector<8x32xf32> to vector<8xf32>
    %5 = vector.shape_cast %4 : vector<8xf32> to vector<8x1xf32>
    %cst_6 = arith.constant 3.200000e+01 : f32
    %6 = vector.broadcast %cst_6 : f32 to vector<8x1xf32>
    %7 = arith.divf %5, %6 : vector<8x1xf32>
    %8 = vector.broadcast %7 : vector<8x1xf32> to vector<8x32xf32>
    %9 = arith.subf %1, %8 : vector<8x32xf32>
    %10 = arith.mulf %9, %9 : vector<8x32xf32>
    %cst_7 = arith.constant dense<0.000000e+00> : vector<8xf32>
    %11 = vector.multi_reduction <add>, %10, %cst_7 [1] : vector<8x32xf32> to vector<8xf32>
    %12 = vector.shape_cast %11 : vector<8xf32> to vector<8x1xf32>
    %cst_8 = arith.constant 3.200000e+01 : f32
    %13 = vector.broadcast %cst_8 : f32 to vector<8x1xf32>
    %14 = arith.divf %12, %13 : vector<8x1xf32>
    %15 = vector.broadcast %7 : vector<8x1xf32> to vector<8x32xf32>
    %16 = arith.subf %1, %15 : vector<8x32xf32>
    %cst_9 = arith.constant 9.99999974E-6 : f32
    %17 = vector.broadcast %cst_9 : f32 to vector<8x1xf32>
    %18 = arith.addf %14, %17 : vector<8x1xf32>
    %19 = math.rsqrt %18 : vector<8x1xf32>
    %20 = vector.broadcast %19 : vector<8x1xf32> to vector<8x32xf32>
    %21 = arith.mulf %16, %20 : vector<8x32xf32>
    %22 = vector.broadcast %2 : vector<1x32xf32> to vector<8x32xf32>
    %23 = arith.mulf %21, %22 : vector<8x32xf32>
    %24 = vector.broadcast %3 : vector<1x32xf32> to vector<8x32xf32>
    %25 = arith.addf %23, %24 : vector<8x32xf32>
    %26 = arith.truncf %25 : vector<8x32xf32> to vector<8x32xbf16>
    %c0_10 = arith.constant 0 : index
    %c0_11 = arith.constant 0 : index
    %27 = vector.load %arg4[%c0_10, %c0_11] : memref<32x96xbf16, #tpu.memory_space<vmem>>, vector<32x96xbf16>
    %cst_12 = arith.constant dense<0.000000e+00> : vector<8x96xf32>
    %28 = tpu.matmul %26, %27, %cst_12 {dimension_numbers = #tpu.dot_dimension_numbers<[1], [0], [0], [1], [0, 0, 1, 1], [], []>} : vector<8x32xbf16>, vector<32x96xbf16>, vector<8x96xf32> -> vector<8x96xf32>
    %29 = vector.extract_strided_slice %28 {offsets = [0, 0], sizes = [8, 32], strides = [1, 1]} : vector<8x96xf32> to vector<8x32xf32>
    %cst_13 = arith.constant 0.176776692 : f32
    %30 = vector.broadcast %cst_13 : f32 to vector<8x32xf32>
    %31 = arith.mulf %29, %30 : vector<8x32xf32>
    %32 = vector.shape_cast %31 : vector<8x32xf32> to vector<8x4x8xf32>
    %33 = arith.truncf %32 : vector<8x4x8xf32> to vector<8x4x8xbf16>
    %34 = vector.extract_strided_slice %28 {offsets = [0, 32], sizes = [8, 32], strides = [1, 1]} : vector<8x96xf32> to vector<8x32xf32>
    %35 = vector.shape_cast %34 : vector<8x32xf32> to vector<8x4x8xf32>
    %36 = arith.truncf %35 : vector<8x4x8xf32> to vector<8x4x8xbf16>
    %37 = vector.extract_strided_slice %28 {offsets = [0, 64], sizes = [8, 32], strides = [1, 1]} : vector<8x96xf32> to vector<8x32xf32>
    %38 = vector.shape_cast %37 : vector<8x32xf32> to vector<8x4x8xf32>
    %39 = arith.truncf %38 : vector<8x4x8xf32> to vector<8x4x8xbf16>
    %40 = tpu.iota {dimensions = array<i32: 0>} : vector<8x8xi32>
    %41 = tpu.iota {dimensions = array<i32: 1>} : vector<8x8xi32>
    %42 = arith.subi %40, %41 : vector<8x8xi32>
    %c2_i32 = arith.constant 2 : i32
    %43 = vector.broadcast %c2_i32 : i32 to vector<8x8xi32>
    %44 = arith.cmpi sle, %42, %43 : vector<8x8xi32>
    %45 = arith.cmpi sle, %41, %40 : vector<8x8xi32>
    %46 = arith.andi %44, %45 : vector<8x8xi1>
    "tpu.trace_start"() <{level = 10 : i32, message = "qhd,khd->hqk"}> : () -> ()
    %cst_14 = arith.constant dense<0.000000e+00> : vector<4x8x8xf32>
    %47 = tpu.matmul %33, %36, %cst_14 {dimension_numbers = #tpu.dot_dimension_numbers<[2], [2], [0], [0], [0, 1, 0, 0, 1, 0], [1], [1]>} : vector<8x4x8xbf16>, vector<8x4x8xbf16>, vector<4x8x8xf32> -> vector<4x8x8xf32>
    "tpu.trace_stop"() : () -> ()
    %48 = vector.shape_cast %46 : vector<8x8xi1> to vector<1x8x8xi1>
    %cst_15 = arith.constant -1.000000e+30 : f32
    %49 = vector.shape_cast %48 : vector<1x8x8xi1> to vector<1x8x8xi1>
    %50 = vector.broadcast %49 : vector<1x8x8xi1> to vector<4x8x8xi1>
    %51 = vector.broadcast %cst_15 : f32 to vector<4x8x8xf32>
    %52 = arith.select %50, %47, %51 : vector<4x8x8xi1>, vector<4x8x8xf32>
    %cst_16 = arith.constant dense<0xFF800000> : vector<4x8xf32>
    %53 = vector.multi_reduction <maximumf>, %52, %cst_16 [2] : vector<4x8x8xf32> to vector<4x8xf32>
    %54 = vector.shape_cast %53 : vector<4x8xf32> to vector<4x8x1xf32>
    %55 = vector.broadcast %54 : vector<4x8x1xf32> to vector<4x8x8xf32>
    %56 = arith.subf %52, %55 : vector<4x8x8xf32>
    %57 = math.exp %56 : vector<4x8x8xf32>
    %cst_17 = arith.constant dense<0.000000e+00> : vector<4x8xf32>
    %58 = vector.multi_reduction <add>, %57, %cst_17 [2] : vector<4x8x8xf32> to vector<4x8xf32>
    %59 = vector.shape_cast %58 : vector<4x8xf32> to vector<4x8x1xf32>
    %60 = tpu.reciprocal %59 : vector<4x8x1xf32> -> vector<4x8x1xf32>
    %61 = vector.broadcast %60 : vector<4x8x1xf32> to vector<4x8x8xf32>
    %62 = arith.mulf %57, %61 : vector<4x8x8xf32>
    %63 = arith.truncf %62 : vector<4x8x8xf32> to vector<4x8x8xbf16>
    %64 = vector.shape_cast %63 : vector<4x8x8xbf16> to vector<4x1x8x8xbf16>
    %c0_18 = arith.constant 0 : index
    %c0_19 = arith.constant 0 : index
    %c0_20 = arith.constant 0 : index
    %c0_21 = arith.constant 0 : index
    %65 = vector.load %arg14[%c0_18, %c0_19, %c0_20, %c0_21] : memref<4x1x8x8xbf16, #tpu.memory_space<vmem>>, vector<4x1x8x8xbf16>
    tpu.vector_store %arg14[%c0_18, %c0_19, %c0_20, %c0_21], %64 {strides = array<i32>} : memref<4x1x8x8xbf16, #tpu.memory_space<vmem>>, vector<4x1x8x8xbf16>,
    %66 = arith.truncf %62 : vector<4x8x8xf32> to vector<4x8x8xbf16>
    "tpu.trace_start"() <{level = 10 : i32, message = "hqk,khd->qhd"}> : () -> ()
    %cst_22 = arith.constant dense<0.000000e+00> : vector<4x8x8xf32>
    %67 = tpu.matmul %39, %66, %cst_22 {dimension_numbers = #tpu.dot_dimension_numbers<[0], [2], [2], [1], [0, 1, 0, 2, 1, 1], [1], [0]>} : vector<8x4x8xbf16>, vector<4x8x8xbf16>, vector<4x8x8xf32> -> vector<4x8x8xf32>
    %68 = tpu.transpose %67, [2, 0, 1] : vector<4x8x8xf32> -> vector<8x4x8xf32>
    "tpu.trace_stop"() : () -> ()
    %69 = vector.shape_cast %68 : vector<8x4x8xf32> to vector<8x32xf32>
    %70 = arith.truncf %69 : vector<8x32xf32> to vector<8x32xbf16>
    %c0_23 = arith.constant 0 : index
    %c0_24 = arith.constant 0 : index
    %71 = vector.load %arg5[%c0_23, %c0_24] : memref<32x32xbf16, #tpu.memory_space<vmem>>, vector<32x32xbf16>
    %cst_25 = arith.constant dense<0.000000e+00> : vector<8x32xf32>
    %72 = tpu.matmul %70, %71, %cst_25 {dimension_numbers = #tpu.dot_dimension_numbers<[1], [0], [0], [1], [0, 0, 1, 1], [], []>} : vector<8x32xbf16>, vector<32x32xbf16>, vector<8x32xf32> -> vector<8x32xf32>
    %c0_26 = arith.constant 0 : index
    %c0_27 = arith.constant 0 : index
    %73 = vector.load %arg6[%c0_26, %c0_27] : memref<1x32xf32, #tpu.memory_space<vmem>>, vector<1x32xf32>
    %74 = vector.broadcast %73 : vector<1x32xf32> to vector<8x32xf32>
    %75 = arith.addf %72, %74 : vector<8x32xf32>
    %76 = arith.addf %1, %75 : vector<8x32xf32>
    %c0_28 = arith.constant 0 : index
    %c0_29 = arith.constant 0 : index
    %77 = vector.load %arg7[%c0_28, %c0_29] : memref<1x32xf32, #tpu.memory_space<vmem>>, vector<1x32xf32>
    %c0_30 = arith.constant 0 : index
    %c0_31 = arith.constant 0 : index
    %78 = vector.load %arg8[%c0_30, %c0_31] : memref<1x32xf32, #tpu.memory_space<vmem>>, vector<1x32xf32>
    %cst_32 = arith.constant dense<0.000000e+00> : vector<8xf32>
    %79 = vector.multi_reduction <add>, %76, %cst_32 [1] : vector<8x32xf32> to vector<8xf32>
    %80 = vector.shape_cast %79 : vector<8xf32> to vector<8x1xf32>
    %cst_33 = arith.constant 3.200000e+01 : f32
    %81 = vector.broadcast %cst_33 : f32 to vector<8x1xf32>
    %82 = arith.divf %80, %81 : vector<8x1xf32>
    %83 = vector.broadcast %82 : vector<8x1xf32> to vector<8x32xf32>
    %84 = arith.subf %76, %83 : vector<8x32xf32>
    %85 = arith.mulf %84, %84 : vector<8x32xf32>
    %cst_34 = arith.constant dense<0.000000e+00> : vector<8xf32>
    %86 = vector.multi_reduction <add>, %85, %cst_34 [1] : vector<8x32xf32> to vector<8xf32>
    %87 = vector.shape_cast %86 : vector<8xf32> to vector<8x1xf32>
    %cst_35 = arith.constant 3.200000e+01 : f32
    %88 = vector.broadcast %cst_35 : f32 to vector<8x1xf32>
    %89 = arith.divf %87, %88 : vector<8x1xf32>
    %90 = vector.broadcast %82 : vector<8x1xf32> to vector<8x32xf32>
    %91 = arith.subf %76, %90 : vector<8x32xf32>
    %cst_36 = arith.constant 9.99999974E-6 : f32
    %92 = vector.broadcast %cst_36 : f32 to vector<8x1xf32>
    %93 = arith.addf %89, %92 : vector<8x1xf32>
    %94 = math.rsqrt %93 : vector<8x1xf32>
    %95 = vector.broadcast %94 : vector<8x1xf32> to vector<8x32xf32>
    %96 = arith.mulf %91, %95 : vector<8x32xf32>
    %97 = vector.broadcast %77 : vector<1x32xf32> to vector<8x32xf32>
    %98 = arith.mulf %96, %97 : vector<8x32xf32>
    %99 = vector.broadcast %78 : vector<1x32xf32> to vector<8x32xf32>
    %100 = arith.addf %98, %99 : vector<8x32xf32>
    %101 = arith.truncf %100 : vector<8x32xf32> to vector<8x32xbf16>
    %c0_37 = arith.constant 0 : index
    %c0_38 = arith.constant 0 : index
    %102 = vector.load %arg9[%c0_37, %c0_38] : memref<32x128xbf16, #tpu.memory_space<vmem>>, vector<32x128xbf16>
    %cst_39 = arith.constant dense<0.000000e+00> : vector<8x128xf32>
    %103 = tpu.matmul %101, %102, %cst_39 {dimension_numbers = #tpu.dot_dimension_numbers<[1], [0], [0], [1], [0, 0, 1, 1], [], []>} : vector<8x32xbf16>, vector<32x128xbf16>, vector<8x128xf32> -> vector<8x128xf32>
    %c0_40 = arith.constant 0 : index
    %c0_41 = arith.constant 0 : index
    %104 = vector.load %arg10[%c0_40, %c0_41] : memref<1x128xf32, #tpu.memory_space<vmem>>, vector<1x128xf32>
    %105 = vector.broadcast %104 : vector<1x128xf32> to vector<8x128xf32>
    %106 = arith.addf %103, %105 : vector<8x128xf32>
    %cst_42 = arith.constant 0.000000e+00 : f32
    %107 = vector.broadcast %cst_42 : f32 to vector<8x128xf32>
    %108 = arith.maximumf %106, %107 : vector<8x128xf32>
    %109 = arith.truncf %108 : vector<8x128xf32> to vector<8x128xbf16>
    %c0_43 = arith.constant 0 : index
    %c0_44 = arith.constant 0 : index
    %110 = vector.load %arg11[%c0_43, %c0_44] : memref<128x32xbf16, #tpu.memory_space<vmem>>, vector<128x32xbf16>
    %cst_45 = arith.constant dense<0.000000e+00> : vector<8x32xf32>
    %111 = tpu.matmul %109, %110, %cst_45 {dimension_numbers = #tpu.dot_dimension_numbers<[1], [0], [0], [1], [0, 0, 1, 1], [], []>} : vector<8x128xbf16>, vector<128x32xbf16>, vector<8x32xf32> -> vector<8x32xf32>
    %c0_46 = arith.constant 0 : index
    %c0_47 = arith.constant 0 : index
    %112 = vector.load %arg12[%c0_46, %c0_47] : memref<1x32xf32, #tpu.memory_space<vmem>>, vector<1x32xf32>
    %113 = vector.broadcast %112 : vector<1x32xf32> to vector<8x32xf32>
    %114 = arith.addf %111, %113 : vector<8x32xf32>
    %115 = arith.addf %76, %114 : vector<8x32xf32>
    %c0_48 = arith.constant 0 : index
    %c0_49 = arith.constant 0 : index
    %c0_50 = arith.constant 0 : index
    %116 = vector.load %arg13[%c0_48, %c0_49, %c0_50] : memref<1x8x32xf32, #tpu.memory_space<vmem>>, vector<1x8x32xf32>
    %117 = vector.shape_cast %116 : vector<1x8x32xf32> to vector<8x32xf32>
    %118 = vector.shape_cast %115 : vector<8x32xf32> to vector<1x8x32xf32>
    tpu.vector_store %arg13[%c0_48, %c0_49, %c0_50], %118 {strides = array<i32>} : memref<1x8x32xf32, #tpu.memory_space<vmem>>, vector<1x8x32xf32>,
    return
  }
  func.func @transform_0(%arg0: i32) -> (i32, i32, i32) {
    %c0_i32 = arith.constant 0 : i32
    %c0_i32_0 = arith.constant 0 : i32
    %c0_i32_1 = arith.constant 0 : i32
    return %arg0, %c0_i32, %c0_i32_0 : i32, i32, i32
  }
  func.func @transform_1(%arg0: i32) -> (i32, i32) {
    %c0_i32 = arith.constant 0 : i32
    %c0_i32_0 = arith.constant 0 : i32
    %c0_i32_1 = arith.constant 0 : i32
    return %c0_i32, %c0_i32_0 : i32, i32
  }
  func.func @transform_2(%arg0: i32) -> (i32, i32) {
    %c0_i32 = arith.constant 0 : i32
    %c0_i32_0 = arith.constant 0 : i32
    %c0_i32_1 = arith.constant 0 : i32
    return %c0_i32, %c0_i32_0 : i32, i32
  }
  func.func @transform_3(%arg0: i32) -> (i32, i32) {
    %c0_i32 = arith.constant 0 : i32
    %c0_i32_0 = arith.constant 0 : i32
    %c0_i32_1 = arith.constant 0 : i32
    return %c0_i32, %c0_i32_0 : i32, i32
  }
  func.func @transform_4(%arg0: i32) -> (i32, i32) {
    %c0_i32 = arith.constant 0 : i32
    %c0_i32_0 = arith.constant 0 : i32
    %c0_i32_1 = arith.constant 0 : i32
    return %c0_i32, %c0_i32_0 : i32, i32
  }
  func.func @transform_5(%arg0: i32) -> (i32, i32) {
    %c0_i32 = arith.constant 0 : i32
    %c0_i32_0 = arith.constant 0 : i32
    %c0_i32_1 = arith.constant 0 : i32
    return %c0_i32, %c0_i32_0 : i32, i32
  }
  func.func @transform_6(%arg0: i32) -> (i32, i32) {
    %c0_i32 = arith.constant 0 : i32
    %c0_i32_0 = arith.constant 0 : i32
    %c0_i32_1 = arith.constant 0 : i32
    return %c0_i32, %c0_i32_0 : i32, i32
  }
  func.func @transform_7(%arg0: i32) -> (i32, i32) {
    %c0_i32 = arith.constant 0 : i32
    %c0_i32_0 = arith.constant 0 : i32
    %c0_i32_1 = arith.constant 0 : i32
    return %c0_i32, %c0_i32_0 : i32, i32
  }
  func.func @transform_8(%arg0: i32) -> (i32, i32) {
    %c0_i32 = arith.constant 0 : i32
    %c0_i32_0 = arith.constant 0 : i32
    %c0_i32_1 = arith.constant 0 : i32
    return %c0_i32, %c0_i32_0 : i32, i32
  }
  func.func @transform_9(%arg0: i32) -> (i32, i32) {
    %c0_i32 = arith.constant 0 : i32
    %c0_i32_0 = arith.constant 0 : i32
    %c0_i32_1 = arith.constant 0 : i32
    return %c0_i32, %c0_i32_0 : i32, i32
  }
  func.func @transform_10(%arg0: i32) -> (i32, i32) {
    %c0_i32 = arith.constant 0 : i32
    %c0_i32_0 = arith.constant 0 : i32
    %c0_i32_1 = arith.constant 0 : i32
    return %c0_i32, %c0_i32_0 : i32, i32
  }
  func.func @transform_11(%arg0: i32) -> (i32, i32) {
    %c0_i32 = arith.constant 0 : i32
    %c0_i32_0 = arith.constant 0 : i32
    %c0_i32_1 = arith.constant 0 : i32
    return %c0_i32, %c0_i32_0 : i32, i32
  }
  func.func @transform_12(%arg0: i32) -> (i32, i32, i32) {
    %c0_i32 = arith.constant 0 : i32
    %c0_i32_0 = arith.constant 0 : i32
    %c0_i32_1 = arith.constant 0 : i32
    return %arg0, %c0_i32, %c0_i32_0 : i32, i32, i32
  }
  func.func @transform_13(%arg0: i32) -> (i32, i32, i32, i32) {
    %c0_i32 = arith.constant 0 : i32
    %c0_i32_0 = arith.constant 0 : i32
    %c0_i32_1 = arith.constant 0 : i32
    %c0_i32_2 = arith.constant 0 : i32
    return %c0_i32, %arg0, %c0_i32_0, %c0_i32_1 : i32, i32, i32, i32
  }
}

module attributes {stable_mosaic.version = 11 : i64} {
  func.func @final_ln_kernel(%arg0: i32, %arg1: memref<1x8x32xf32, #tpu.memory_space<vmem>>, %arg2: memref<1x32xf32, #tpu.memory_space<vmem>>, %arg3: memref<1x32xf32, #tpu.memory_space<vmem>>, %arg4: memref<1x8x32xbf16, #tpu.memory_space<vmem>>) attributes {dimension_semantics = [#tpu.dimension_semantics<parallel>], iteration_bounds = array<i64: 2>, scalar_prefetch = 0 : i64, scratch_operands = 0 : i64, tpu.core_type = #tpu.core_type<tc>, window_params = [{transform_indices = @transform_0, window_bounds = array<i64: 1, 8, 32>}, {pipeline_mode = #tpu.pipeline_mode<synchronous>, transform_indices = @transform_1, window_bounds = array<i64: 1, 32>}, {pipeline_mode = #tpu.pipeline_mode<synchronous>, transform_indices = @transform_2, window_bounds = array<i64: 1, 32>}, {transform_indices = @transform_3, window_bounds = array<i64: 1, 8, 32>}]} {
    %c0 = arith.constant 0 : index
    %c0_0 = arith.constant 0 : index
    %c0_1 = arith.constant 0 : index
    %0 = vector.load %arg1[%c0, %c0_0, %c0_1] : memref<1x8x32xf32, #tpu.memory_space<vmem>>, vector<1x8x32xf32>
    %1 = vector.shape_cast %0 : vector<1x8x32xf32> to vector<8x32xf32>
    %c0_2 = arith.constant 0 : index
    %c0_3 = arith.constant 0 : index
    %2 = vector.load %arg2[%c0_2, %c0_3] : memref<1x32xf32, #tpu.memory_space<vmem>>, vector<1x32xf32>
    %c0_4 = arith.constant 0 : index
    %c0_5 = arith.constant 0 : index
    %3 = vector.load %arg3[%c0_4, %c0_5] : memref<1x32xf32, #tpu.memory_space<vmem>>, vector<1x32xf32>
    %cst = arith.constant dense<0.000000e+00> : vector<8xf32>
    %4 = vector.multi_reduction <add>, %1, %cst [1] : vector<8x32xf32> to vector<8xf32>
    %5 = vector.shape_cast %4 : vector<8xf32> to vector<8x1xf32>
    %cst_6 = arith.constant 3.200000e+01 : f32
    %6 = vector.broadcast %cst_6 : f32 to vector<8x1xf32>
    %7 = arith.divf %5, %6 : vector<8x1xf32>
    %8 = vector.broadcast %7 : vector<8x1xf32> to vector<8x32xf32>
    %9 = arith.subf %1, %8 : vector<8x32xf32>
    %10 = arith.mulf %9, %9 : vector<8x32xf32>
    %cst_7 = arith.constant dense<0.000000e+00> : vector<8xf32>
    %11 = vector.multi_reduction <add>, %10, %cst_7 [1] : vector<8x32xf32> to vector<8xf32>
    %12 = vector.shape_cast %11 : vector<8xf32> to vector<8x1xf32>
    %cst_8 = arith.constant 3.200000e+01 : f32
    %13 = vector.broadcast %cst_8 : f32 to vector<8x1xf32>
    %14 = arith.divf %12, %13 : vector<8x1xf32>
    %15 = vector.broadcast %7 : vector<8x1xf32> to vector<8x32xf32>
    %16 = arith.subf %1, %15 : vector<8x32xf32>
    %cst_9 = arith.constant 9.99999974E-6 : f32
    %17 = vector.broadcast %cst_9 : f32 to vector<8x1xf32>
    %18 = arith.addf %14, %17 : vector<8x1xf32>
    %19 = math.rsqrt %18 : vector<8x1xf32>
    %20 = vector.broadcast %19 : vector<8x1xf32> to vector<8x32xf32>
    %21 = arith.mulf %16, %20 : vector<8x32xf32>
    %22 = vector.broadcast %2 : vector<1x32xf32> to vector<8x32xf32>
    %23 = arith.mulf %21, %22 : vector<8x32xf32>
    %24 = vector.broadcast %3 : vector<1x32xf32> to vector<8x32xf32>
    %25 = arith.addf %23, %24 : vector<8x32xf32>
    %26 = arith.truncf %25 : vector<8x32xf32> to vector<8x32xbf16>
    %c0_10 = arith.constant 0 : index
    %c0_11 = arith.constant 0 : index
    %c0_12 = arith.constant 0 : index
    %27 = vector.load %arg4[%c0_10, %c0_11, %c0_12] : memref<1x8x32xbf16, #tpu.memory_space<vmem>>, vector<1x8x32xbf16>
    %28 = vector.shape_cast %27 : vector<1x8x32xbf16> to vector<8x32xbf16>
    %29 = vector.shape_cast %26 : vector<8x32xbf16> to vector<1x8x32xbf16>
    tpu.vector_store %arg4[%c0_10, %c0_11, %c0_12], %29 {strides = array<i32>} : memref<1x8x32xbf16, #tpu.memory_space<vmem>>, vector<1x8x32xbf16>,
    return
  }
  func.func @transform_0(%arg0: i32) -> (i32, i32, i32) {
    %c0_i32 = arith.constant 0 : i32
    %c0_i32_0 = arith.constant 0 : i32
    %c0_i32_1 = arith.constant 0 : i32
    return %arg0, %c0_i32, %c0_i32_0 : i32, i32, i32
  }
  func.func @transform_1(%arg0: i32) -> (i32, i32) {
    %c0_i32 = arith.constant 0 : i32
    %c0_i32_0 = arith.constant 0 : i32
    %c0_i32_1 = arith.constant 0 : i32
    return %c0_i32, %c0_i32_0 : i32, i32
  }
  func.func @transform_2(%arg0: i32) -> (i32, i32) {
    %c0_i32 = arith.constant 0 : i32
    %c0_i32_0 = arith.constant 0 : i32
    %c0_i32_1 = arith.constant 0 : i32
    return %c0_i32, %c0_i32_0 : i32, i32
  }
  func.func @transform_3(%arg0: i32) -> (i32, i32, i32) {
    %c0_i32 = arith.constant 0 : i32
    %c0_i32_0 = arith.constant 0 : i32
    %c0_i32_1 = arith.constant 0 : i32
    return %arg0, %c0_i32, %c0_i32_0 : i32, i32, i32
  }
}

module attributes {stable_mosaic.version = 11 : i64} {
  func.func @lm_head_kernel(%arg0: i32, %arg1: i32, %arg2: memref<1x8x32xbf16, #tpu.memory_space<vmem>>, %arg3: memref<32x128xbf16, #tpu.memory_space<vmem>>, %arg4: memref<1x128xf32, #tpu.memory_space<vmem>>, %arg5: memref<1x8x128xf32, #tpu.memory_space<vmem>>) attributes {dimension_semantics = [#tpu.dimension_semantics<parallel>, #tpu.dimension_semantics<parallel>], iteration_bounds = array<i64: 1, 2>, scalar_prefetch = 0 : i64, scratch_operands = 0 : i64, tpu.core_type = #tpu.core_type<tc>, window_params = [{transform_indices = @transform_0, window_bounds = array<i64: 1, 8, 32>}, {transform_indices = @transform_1, window_bounds = array<i64: 32, 128>}, {transform_indices = @transform_2, window_bounds = array<i64: 1, 128>}, {transform_indices = @transform_3, window_bounds = array<i64: 1, 8, 128>}]} {
    %c0 = arith.constant 0 : index
    %c0_0 = arith.constant 0 : index
    %c0_1 = arith.constant 0 : index
    %0 = vector.load %arg2[%c0, %c0_0, %c0_1] : memref<1x8x32xbf16, #tpu.memory_space<vmem>>, vector<1x8x32xbf16>
    %1 = vector.shape_cast %0 : vector<1x8x32xbf16> to vector<8x32xbf16>
    %c0_2 = arith.constant 0 : index
    %c0_3 = arith.constant 0 : index
    %2 = vector.load %arg3[%c0_2, %c0_3] : memref<32x128xbf16, #tpu.memory_space<vmem>>, vector<32x128xbf16>
    %cst = arith.constant dense<0.000000e+00> : vector<8x128xf32>
    %3 = tpu.matmul %1, %2, %cst {dimension_numbers = #tpu.dot_dimension_numbers<[1], [0], [0], [1], [0, 0, 1, 1], [], []>} : vector<8x32xbf16>, vector<32x128xbf16>, vector<8x128xf32> -> vector<8x128xf32>
    %c0_4 = arith.constant 0 : index
    %c0_5 = arith.constant 0 : index
    %4 = vector.load %arg4[%c0_4, %c0_5] : memref<1x128xf32, #tpu.memory_space<vmem>>, vector<1x128xf32>
    %5 = vector.broadcast %4 : vector<1x128xf32> to vector<8x128xf32>
    %6 = arith.addf %3, %5 : vector<8x128xf32>
    %c0_6 = arith.constant 0 : index
    %c0_7 = arith.constant 0 : index
    %c0_8 = arith.constant 0 : index
    %7 = vector.load %arg5[%c0_6, %c0_7, %c0_8] : memref<1x8x128xf32, #tpu.memory_space<vmem>>, vector<1x8x128xf32>
    %8 = vector.shape_cast %7 : vector<1x8x128xf32> to vector<8x128xf32>
    %9 = vector.shape_cast %6 : vector<8x128xf32> to vector<1x8x128xf32>
    tpu.vector_store %arg5[%c0_6, %c0_7, %c0_8], %9 {strides = array<i32>} : memref<1x8x128xf32, #tpu.memory_space<vmem>>, vector<1x8x128xf32>,
    return
  }
  func.func @transform_0(%arg0: i32, %arg1: i32) -> (i32, i32, i32) {
    %c0_i32 = arith.constant 0 : i32
    %c0_i32_0 = arith.constant 0 : i32
    %c0_i32_1 = arith.constant 0 : i32
    return %arg1, %c0_i32, %c0_i32_0 : i32, i32, i32
  }
  func.func @transform_1(%arg0: i32, %arg1: i32) -> (i32, i32) {
    %c0_i32 = arith.constant 0 : i32
    %c0_i32_0 = arith.constant 0 : i32
    return %c0_i32, %arg0 : i32, i32
  }
  func.func @transform_2(%arg0: i32, %arg1: i32) -> (i32, i32) {
    %c0_i32 = arith.constant 0 : i32
    %c0_i32_0 = arith.constant 0 : i32
    return %c0_i32, %arg0 : i32, i32
  }
  func.func @transform_3(%arg0: i32, %arg1: i32) -> (i32, i32, i32) {
    %c0_i32 = arith.constant 0 : i32
    %c0_i32_0 = arith.constant 0 : i32
    return %arg1, %c0_i32, %arg0 : i32, i32, i32
  }
}

</mosaic_0001>

<bundles_post_ra>
// kernel: decoder2_forward.6
= control target key start
LH: loop header
LB: loop body
LE: loop exit
PB: predicated region body
PF: predicated region fallthrough
CT: control target
= control target key end

     0   :  { %s303_s12 = smov 0   ;;  %s326_s0 = inlined_call_operand.vmem [shape: f32[2,8,32], index: 0, kind: input, shape index: {}]   ;;  %s327_s1 = inlined_call_operand.vmem [shape: f32[1,32], index: 1, kind: input, shape index: {}]   ;;  %s328_s2 = inlined_call_operand.vmem [shape: f32[1,32], index: 2, kind: input, shape index: {}]   ;;  %s329_s3 = inlined_call_operand.vmem [shape: bf16[2,8,32], index: 3, kind: output, shape index: {}]  }
   0x1 LB: > { %s254_s13 = sadd.s32 4294967295, %s281_s12   ;;  %p258_p0 = scmp.ge.s32.totalorder %s281_s12, 1  ;;  %s281_s12 = sphi %s303_s12, %s13_s12  }
   0x2   : > { %p136_p1 = scmp.lt.s32.totalorder %s281_s12, 3 }
   0x4   : > { %p137_p2 = pnand %p258_p0, %p136_p1 }
   0x5   : > { %p158_p3 = scmp.lt.s32.totalorder (!%p137_p2), %s254_s13, 1  ;;  %vm169_vm0 = vcmask (!%p137_p2), 261120   ;;  %v261_v11 = vld [vmem:[%s327_s1] ss:$0 sm:$0xff] (!%p137_p2)  ;;  %vm199_vm1 = vcmask (!%p137_p2), 257024  }
   0x6   : > { %140 = sbr.rel (%p137_p2) target bundleno = 333 (0x14d), region = 32  ;;  %v262_v13 = vld [vmem:[%s328_s2] ss:$0 sm:$0xff] (!%p137_p2) }
   0xd   : > { %s331_s13 = smov (!%p158_p3, %s254_s13), 1 }
   0xe   : > { %s259_s14 = sshll.u32 %s331_s13, 3  ;;  %s260_s22 = sshll.u32 %s331_s13, 2 }
   0xf   : > { %s161_s17 = scalar_lea.vmem %s326_s0, %s259_s14  ;;  %s165_s25 = scalar_lea.vmem %s329_s3, %s260_s22 }
  0x10   : > { %v166_v0 = vld [vmem:[%s161_s17] sm:$0xff] }
  0x11   : > { %v170_v1 = vsel %vm169_vm0, %v166_v0, 0.0 }
  0x12   : > { %171 = vadd.xlane.f32.xlu0 %v170_v1 }
  0x9f   : > { %v172_v2 = vpop.xlane.xlu0 %171 }
  0xa0   : > { %v174_v3 = vmul.f32 0.03125, %v172_v2 }
  0xa2   : > { %v175_v4 = vsub.f32 %v166_v0, %v174_v3 }
  0xa4   : > { %v176_v5 = vmul.f32 %v175_v4, %v175_v4 }
  0xa6   : > { %v177_v6 = vsel %vm169_vm0, %v176_v5, 0.0 }
  0xa7   : > { %178 = vadd.xlane.f32.xlu0 %v177_v6 }
 0x134   : > { %v179_v7 = vpop.xlane.xlu0 %178 }
 0x135   : > { %v180_v8 = vmul.f32 0.03125, %v179_v7 }
 0x137   : > { %v181_v9 = vadd.f32 1e-05, %v180_v8 }
 0x139   : > { %273 = vrsqrt.f32 %v181_v9 }
 0x143   : > { %v274_v10 = vpop.eup %273 }
 0x144   : > { %v183_v12 = vmul.f32 %v274_v10, %v175_v4 }
 0x146   : > { %v190_v14 = vmul.f32 %v261_v11, %v183_v12 }
 0x148   : > { %v197_v15 = vadd.f32 %v262_v13, %v190_v14 }
 0x14a   : > { %v198_v16 = vpack.c.bf16 %v197_v15, %v197_v15 }
 0x14c   : > { %200 = vst.msk [vmem:[%s165_s25] sm:$0xf] %vm199_vm1, %v198_v16 }
 0x14d PF: > { %s13_s12 = sadd.s32 1, %s281_s12  }
 0x14e   : > { %p10_p4 = scmp.ge.s32.totalorder %s13_s12, 4  }
 0x150   :  { %12 = sbr.rel (!%p10_p4) target bundleno = 1 (0x1), region = 62 }

// kernel: decoder2_forward.7
= control target key start
LH: loop header
LB: loop body
LE: loop exit
PB: predicated region body
PF: predicated region fallthrough
CT: control target
= control target key end

     0   :  { %8 = vsyncpa [#allocation3], 0  ;;  %s702_s0 = inlined_call_operand.vmem [shape: bf16[2,8,32], index: 0, kind: input, shape index: {}]   ;;  %s703_s1 = inlined_call_operand.vmem [shape: bf16[32,128], index: 1, kind: input, shape index: {}]   ;;  %s704_s2 = inlined_call_operand.vmem [shape: f32[1,128], index: 2, kind: input, shape index: {}]   ;;  %s705_s3 = inlined_call_operand.hbm [shape: f32[2,8,128], index: 3, kind: output, shape index: {}]  }
   0x1   :  { %10 = vsyncpa [#allocation3 + $0x1], 0  ;;  %s581_s12 = smov 0   ;;  %s583_s13 = smov 0  }
   0x2   :  { %s585_s14 = smov 0   ;;  %s587_s15 = smov 0  }
   0x3   :  { %s589_s16 = smov 0   ;;  %s591_s17 = smov 0  }
   0x4 LB: > { %s391_s18 = sadd.s32 4294967295, %s556_s17   ;;  %s392_s19 = sadd.s32 4294967294, %s556_s17   ;;  %s556_s17 = sphi %s591_s17, %s16_s17   ;;  %s552_s16 = sphi %s589_s16, %s712_s16   ;;  %s548_s15 = sphi %s587_s15, %s711_s15   ;;  %s544_s14 = sphi %s585_s14, %s710_s14   ;;  %s540_s13 = sphi %s583_s13, %s709_s13   ;;  %s536_s12 = sphi %s581_s12, %s708_s12  }
   0x5   : > { %s25_s20 = sadd.s32 1, %s552_s16  ;;  %s115_s21 = sadd.s32 1, %s544_s14 }
   0x6   : > { %p26_p0 = scmp.ge.s32.totalorder %s25_s20, 2  ;;  %p125_p1 = scmp.ne.s32.totalorder %s544_s14, %s540_s13 }
   0x7   : > { %p126_p2 = scmp.eq.s32.totalorder %s391_s18, 1  ;;  %p131_p3 = scmp.ne.s32.totalorder %s540_s13, %s536_s12 }
   0x8   : > { %s714_s20 = smov (%p26_p0, %s25_s20), 0  ;;  %p132_p5 = scmp.eq.s32.totalorder %s392_s19, 1 }
   0x9   : > { %p621_p4 = por %p126_p2, %p125_p1  ;;  %s110_s23 = ssub.s32 %s552_s16, %s714_s20 }
   0xa   : > { %p397_p6 = scmp.ge.s32.totalorder %s556_s17, 1  ;;  %p113_p7 = scmp.eq.s32.totalorder %s110_s23, 0 }
   0xb   : > { %p628_p8 = por %p132_p5, %p131_p3  ;;  %p170_p9 = scmp.lt.s32.totalorder %s556_s17, 3 }
   0xc   : > { %s634_s25 = scalar_select %p113_p7, %s544_s14, %s115_s21  }
   0xd   : > { %p171_p10 = pnand %p397_p6, %p170_p9 }
   0xe   : > { %v476_v0 = vld [vmem:[%s703_s1] sm:$0xff] (!%p171_p10)   ;;  %v558_v1 = vmov (!%p171_p10), 0.0   ;;  %v477_v2 = vld [vmem:[%s703_s1 + $0x8] sm:$0xff] (!%p171_p10)   ;;  %vm559_vm0 = vmmov (!%p171_p10), 0   ;;  %p200_p11 = scmp.lt.s32.totalorder (!%p171_p10), %s548_s15, 1  ;;  %vm236_vm1 = vcmask (!%p171_p10), 261120  }
   0xf   : > { %174 = sbr.rel (%p171_p10) target bundleno = 255 (0xff), region = 32  ;;  %411 = vmatprep.subr.bf16.mxu0 (!%p171_p10), %v558_v1  ;;  %415 = vmatprep.mubr.msk.bf16.mxu0 (!%p171_p10), %vm559_vm0, %v558_v1  ;;  %s197_s8 = sand.u32 (!%p171_p10), 1, %s540_s13   ;;  %v400_v4 = vld [vmem:[%s704_s2] ss:$0 sm:$0xff] (!%p171_p10) }
  0x10   : > { %412 = vmatpush3.bf16.msra.mxu0 (!%p171_p10), %v476_v0  ;;  %s398_s9 = sshll.u32 (!%p171_p10), %s197_s8, 3  ;;  %s405_s18 = sshll.u32 (!%p171_p10), %s548_s15, 7 }
  0x11   : > { %413 = vmatprep.subr.bf16.mxu0 (!%p171_p10), %v558_v1  ;;  %s199_s19 = scalar_lea.vmem (!%p171_p10), [#allocation2], %s398_s9  ;;  %s655_s27 = scalar_lea.hbm (!%p171_p10), %s705_s3, %s405_s18 }
  0x12   : > { %s296_s21 = sshll.u32 (!%p171_p10), %s199_s19, 4  ;;  %s282_s28 = scalar_lea.sflag (!%p171_p10), [#allocation3], %s197_s8  ;;  %s657_s21 = int_to_ptr.vmem [resolvable:$true] %s296_s21 }
  0x13   : > { %s560_s29 = smov (!%p171_p10), [#allocation2]  }
  0x14   : > { %414 = vmatpush3.bf16.msra.mxu0 (!%p171_p10), %v477_v2 }
  0x16   : > { %s201_s30 = scalar_select %p200_p11, %s548_s15, 1 }
  0x17   : > { %s478_s15 = scalar_lea.vmem %s657_s21, 128 }
  0x18   : > { %s399_s4 = sshll.u32 %s201_s30, 2  ;;  %p479_p12 = scmp.ne.s32.totalorder %s657_s21, %s478_s15 }
  0x19   : > { %s203_s7 = scalar_lea.vmem %s702_s0, %s399_s4  ;;  %s482_s30 = sshll.u32 %s560_s29, 4  ;;  %s483_s30 = int_to_ptr.vmem [resolvable:$false] %s482_s30 }
  0x1a   : > { %v212_v3 = vld [vmem:[%s203_s7] sm:$0xf]  ;;  %p480_p13 = pnand %p479_p12, %p621_p4  ;;  %s484_s4 = scalar_lea.vmem %s483_s30, 256 }
  0x1b   : > { %416 = vmatmul.mubr.msk.bf16.vlgmr.msra.gmra.mrb[0].mxu0 %vm236_vm1, %v212_v3  ;;  %p485_p1 = scmp.lt.s32.totalorder %s657_s21, %s483_s30  ;;  %p486_p2 = scmp.lt.s32.totalorder %s484_s4, %s478_s15 }
  0x1c   : > { %p481_p0 = pneg %p480_p13 }
  0x1d   : > { %p487_p3 = por %p486_p2, %p485_p1 }
  0x1f   : > { %p488_p5 = pnand %p487_p3, %p481_p0 }
  0xee   : > { %v274_v5 = vpop.f32.mrb[0].mxu0 }
  0xef   : > { %v275_v6 = vadd.f32 %v400_v4, %v274_v5  ;;  %v417_v7 = vpop.f32.mrb[1].mxu0 }
  0xf0   : > { %v277_v8 = vpop.f32.mrb[2].mxu0 }
  0xf1   : > { %280 = vst [vmem:[%s199_s19] sm:$0xff] %v275_v6  ;;  %v418_v9 = vpop.f32.mrb[3].mxu0 }
  0xf2   : > { %491 = shalt.err (!%p488_p5)
}
  0xf3   : > { %s492_s5 = scalar_lea.hbm %s655_s27, 128  ;;  %s496_s8 = scalar_lea.hbm %s705_s3, 256 }
  0xf4   : > { %p493_p6 = scmp.ne.s32.totalorder %s655_s27, %s492_s5  ;;  %p497_p10 = scmp.lt.u32.totalorder %s655_s27, %s705_s3 }
  0xf5   : > { %p498_p11 = scmp.lt.u32.totalorder %s496_s8, %s492_s5  ;;  %p500_p13 = scmp.lt.u32.totalorder %s492_s5, %s655_s27 }
  0xf6   : > { %p494_p7 = pnand %p493_p6, %p621_p4 }
  0xf7   : > { %p499_p12 = por %p498_p11, %p497_p10 }
  0xf8   : > { %p495_p9 = pneg %p494_p7 }
  0xf9   : > { %p501_p0 = por %p500_p13, %p499_p12 }
  0xfb   : > { %p502_p1 = pnand %p501_p0, %p495_p9 }
  0xfd   : > { %505 = shalt.err (!%p502_p1)
}
  0xfe   : > { %419 = dma.vmem_to_hbm [thread:$0]  (%p621_p4), %s657_s21, 128, %s655_s27, %s282_s28  }
  0xff PF: > { %p425_p2 = scmp.ge.s32.totalorder %s556_s17, 2  ;;  %s308_s11 = sand.u32 1, %s536_s12  }
 0x100   : > { %s309_s18 = scalar_lea.sflag [#allocation3], %s308_s11 }
 0x101   : > { %p422_p3 = pnand %p425_p2, %p628_p8 }
 0x103   : > { %531 = dma.done.wait (!%p422_p3), %s309_s18, 128  }
 0x104   : > { %533 = vsyncadd (!%p422_p3), %s309_s18, 4294967168  ;;  %s16_s17 = sadd.s32 1, %s556_s17   ;;  %s708_s12 = smov %s540_s13 }
 0x105   : > { %p13_p5 = scmp.ge.s32.totalorder %s16_s17, 4   ;;  %s709_s13 = smov %s544_s14 }
 0x106   : > { %s710_s14 = smov %s634_s25  ;;  %s711_s15 = smov %s552_s16 }
 0x107   : > { %s712_s16 = smov %s714_s20  ;;  %15 = sbr.rel (!%p13_p5) target bundleno = 4 (0x4), region = 73 }
 0x10e   :  { %314 = vsyncpa [#allocation3], 1 }
 0x10f   :  { %316 = vsyncpa [#allocation3 + $0x1], 1 }

// kernel: decoder2_forward.4
= control target key start
LH: loop header
LB: loop body
LE: loop exit
PB: predicated region body
PF: predicated region fallthrough
CT: control target
= control target key end

     0   :  { %s3197_s25 = smov 0   ;;  %s3199_s26 = smov 0   ;;  %s3596_s0 = inlined_call_operand.vmem [shape: f32[2,8,32], index: 0, kind: input, shape index: {}]   ;;  %s3597_s1 = inlined_call_operand.vmem [shape: f32[1,32], index: 1, kind: input, shape index: {}]   ;;  %s3598_s2 = inlined_call_operand.vmem [shape: f32[1,32], index: 2, kind: input, shape index: {}]   ;;  %s3599_s3 = inlined_call_operand.vmem [shape: bf16[32,96], index: 3, kind: input, shape index: {}]   ;;  %s3600_s4 = inlined_call_operand.vmem [shape: bf16[32,32], index: 4, kind: input, shape index: {}]   ;;  %s3601_s5 = inlined_call_operand.vmem [shape: f32[1,32], index: 5, kind: input, shape index: {}]   ;;  %s3602_s6 = inlined_call_operand.vmem [shape: f32[1,32], index: 6, kind: input, shape index: {}]   ;;  %s3603_s7 = inlined_call_operand.vmem [shape: f32[1,32], index: 7, kind: input, shape index: {}]   ;;  %s3604_s8 = inlined_call_operand.vmem [shape: bf16[32,128], index: 8, kind: input, shape index: {}]   ;;  %s3605_s9 = inlined_call_operand.vmem [shape: f32[1,128], index: 9, kind: input, shape index: {}]   ;;  %s3606_s10 = inlined_call_operand.vmem [shape: bf16[128,32], index: 10, kind: input, shape index: {}]   ;;  %s3607_s11 = inlined_call_operand.vmem [shape: f32[1,32], index: 11, kind: input, shape index: {}]   ;;  %s3608_s12 = inlined_call_operand.vmem [shape: f32[2,8,32], index: 12, kind: output, shape index: {0}]   ;;  %s3609_s13 = inlined_call_operand.vmem [shape: bf16[4,2,8,8], index: 13, kind: output, shape index: {1}]  }
   0x1   :  { %s3201_s27 = smov 0  }
   0x2 LB: > { %s3210_s28 = sadd.s32 4294967295, %s3112_s27   ;;  %s3212_s29 = sadd.s32 1, %s3112_s27   ;;  %s3112_s27 = sphi %s3201_s27, %s3615_s27   ;;  %s3108_s26 = sphi %s3199_s26, %s3614_s26   ;;  %s3104_s25 = sphi %s3197_s25, %s3613_s25  }
   0x3   : > { %s311_s30 = ssub.s32 %s3112_s27, %s3212_s29  ;;  %s314_s14 = sadd.s32 1, %s3108_s26 }
   0x4   : > { %p312_p0 = scmp.eq.s32.totalorder %s311_s30, 0  ;;  %p324_p1 = scmp.ne.s32.totalorder %s3108_s26, %s3104_s25 }
   0x5   : > { %p325_p2 = scmp.eq.s32.totalorder %s3210_s28, 1  ;;  %p2846_p3 = scmp.ge.s32.totalorder %s3112_s27, 1 }
   0x6   : > { %s3220_s15 = scalar_select %p312_p0, %s3108_s26, %s314_s14  }
   0x7   : > { %p3222_p4 = por %p325_p2, %p324_p1  ;;  %p389_p5 = scmp.lt.s32.totalorder %s3112_s27, 3 }
   0x9   : > { %p390_p6 = pnand %p2846_p3, %p389_p5 }
   0xa   : > { %p435_p7 = scmp.lt.s32.totalorder (!%p390_p6), %s3210_s28, 1  ;;  %vm447_vm0 = vcmask (!%p390_p6), 261120   ;;  %v3055_v7 = vld [vmem:[%s3599_s3] sm:$0xff] (!%p390_p6)   ;;  %v3114_v8 = vmov (!%p390_p6), 0.0   ;;  %vm3115_vm1 = vmmov (!%p390_p6), 0   ;;  %v3056_v9 = vld [vmem:[%s3599_s3 + $0x8] sm:$0xff] (!%p390_p6)   ;;  %v552_v30 = vlaneseq (!%p390_p6) }
   0xb   : > { %393 = sbr.rel (%p390_p6) target bundleno = 3145 (0xc49), region = 68  ;;  %2926 = vmatprep.subr.bf16.mxu1 (!%p390_p6), %v3114_v8  ;;  %2930 = vmatprep.mubr.msk.bf16.mxu1 (!%p390_p6), %vm3115_vm1, %v3114_v8  ;;  %v2850_v14 = vld [vmem:[%s3597_s1] ss:$0 sm:$0xff] (!%p390_p6)  ;;  %s3116_s22 = smov (!%p390_p6), 104   ;;  %v3120_v28 = vmov (!%p390_p6), 1983009808  }
   0xc   : > { %2927 = vmatpush3.bf16.msra.mxu1 (!%p390_p6), %v3055_v7  ;;  %2946 = vmatprep.subr.bf16.mxu0 (!%p390_p6), %v3114_v8  ;;  %v2851_v16 = vld [vmem:[%s3598_s2] ss:$0 sm:$0xff] (!%p390_p6)  ;;  %s3117_s23 = smov (!%p390_p6), 120   ;;  %s3118_s24 = smov (!%p390_p6), 112   ;;  %v550_v29 = vunpack.c.l.s4 (!%p390_p6), %v3120_v28  ;;  %v3283_v33 = vshrl.u32 (!%p390_p6), %v552_v30, 7  ;;  %vm1298_vm2 = vcmask (!%p390_p6), 1043456  }
   0xd   : > { %2928 = vmatprep.subr.bf16.mxu1 (!%p390_p6), %v3114_v8  ;;  %2948 = vmatprep.mubr.msk.bf16.mxu0 (!%p390_p6), %vm3115_vm1, %v3114_v8  ;;  %s3119_s27 = smov (!%p390_p6), 96   ;;  %v3121_v34 = vmov (!%p390_p6), 1934713408   ;;  %s3123_s30 = smov (!%p390_p6), 64   ;;  %vm1294_vm3 = vcmask (!%p390_p6), 64512   ;;  %vm1534_vm7 = vcmask (!%p390_p6), 60416  }
   0xe   : > { %v551_v32 = vunpack.c.0.s8 (!%p390_p6), %v550_v29  ;;  %v582_v35 = vunpack.c.l.s4 (!%p390_p6), %v3121_v34  ;;  %s432_s14 = sand.u32 (!%p390_p6), 1, %s3104_s25   ;;  %vm2418_vm8 = vcmask (!%p390_p6), 130048   ;;  %vm2420_vm9 = vcmask (!%p390_p6), 195584  }
   0xf   : > { %s2847_s19 = sshll.u32 (!%p390_p6), %s432_s14, 4  ;;  %s3126_s14 = smov (!%p390_p6), 24  }
  0x10   : > { %2929 = vmatpush3.bf16.msra.mxu1 (!%p390_p6), %v3056_v9  ;;  %v3286_v37 = vsub.s32 (!%p390_p6), %v551_v32, %v3283_v33  ;;  %v583_v39 = vunpack.c.0.s8 (!%p390_p6), %v582_v35  ;;  %s3446_s25 = scalar_lea.vmem (!%p390_p6), [#allocation2], %s2847_s19 }
  0x11   : > { %2934 = vmatprep.subr.bf16.mxu1 (!%p390_p6), %v3114_v8 }
  0x12   : > { %s3228_s17 = scalar_select %p435_p7, %s3210_s28, 1  ;;  %v3292_v47 = vsub.s32 %v583_v39, %v3283_v33 }
  0x14   : > { %s2848_s18 = sshll.u32 %s3228_s17, 3 }
  0x15   : > { %s3236_s21 = scalar_lea.vmem %s3596_s0, %s2848_s18 }
  0x16   : > { %v444_v0 = vld [vmem:[%s3236_s21] sm:$0xff] }
  0x17   : > { %v448_v1 = vsel %vm447_vm0, %v444_v0, 0.0 }
  0x18   : > { %449 = vadd.xlane.f32.xlu0 %v448_v1 }
  0xa5   : > { %v450_v2 = vpop.xlane.xlu0 %449 }
  0xa6   : > { %v452_v3 = vmul.f32 0.03125, %v450_v2 }
  0xa8   : > { %v453_v4 = vsub.f32 %v444_v0, %v452_v3 }
  0xaa   : > { %v454_v5 = vmul.f32 %v453_v4, %v453_v4 }
  0xac   : > { %v455_v6 = vsel %vm447_vm0, %v454_v5, 0.0 }
  0xad   : > { %456 = vadd.xlane.f32.xlu0 %v455_v6 }
 0x13a   : > { %v457_v10 = vpop.xlane.xlu0 %456 }
 0x13b   : > { %v458_v11 = vmul.f32 0.03125, %v457_v10 }
 0x13d   : > { %v459_v12 = vadd.f32 1e-05, %v458_v11 }
 0x13f   : > { %3069 = vrsqrt.f32 %v459_v12 }
 0x149   : > { %v3070_v13 = vpop.eup %3069 }
 0x14a   : > { %v461_v15 = vmul.f32 %v3070_v13, %v453_v4 }
 0x14c   : > { %v468_v17 = vmul.f32 %v2850_v14, %v461_v15 }
 0x14e   : > { %v475_v18 = vadd.f32 %v2851_v16, %v468_v17 }
 0x150   : > { %v476_v19 = vpack.c.bf16 %v475_v18, %v475_v18 }
 0x152   : > { %2931 = vmatmul.mubr.msk.bf16.vlgmr.msra.gmra.mrb[0].mxu1 %vm447_vm0, %v476_v19 }
 0x153   : > { %2936 = vmatprep.mubr.msk.bf16.mxu1 %vm3115_vm1, %v3114_v8 }
 0x225   : > { %v3264_v20 = vpop.f32.mrb[0].mxu1 }
 0x226   : > { %628 = vrot.lane.b32.xlu0 %v3264_v20, %s3116_s22  ;;  %624 = vrot.lane.b32.xlu1 %v3264_v20, %s3117_s23  ;;  %v2932_v21 = vpop.f32.mrb[1].mxu1  ;;  %v3304_v5 = vmul.f32 0.17677669, %v3264_v20 }
 0x227   : > { %v533_v22 = vpop.f32.mrb[2].mxu1 }
 0x228   : > { %v2933_v23 = vpop.f32.mrb[3].mxu1 }
 0x22a   : > { %626 = vrot.lane.b32.xlu1 %v3264_v20, %s3118_s24 }
 0x22e   : > { %630 = vrot.lane.b32.xlu1 %v3264_v20, %s3119_s27 }
 0x298   : > { %v3273_v24 = vpop.permute.xlu1 %624  ;;  %v3279_v26 = vpop.permute.xlu0 %628 }
 0x299   : > { %632 = vrot.lane.b32.xlu1 %v3273_v24, %s3119_s27 }
 0x29c   : > { %v3276_v25 = vpop.permute.xlu1 %626 }
 0x29d   : > { %634 = vrot.lane.b32.xlu1 %v3276_v25, %s3119_s27 }
 0x2a0   : > { %v631_v27 = vpop.permute.xlu1 %630 }
 0x2a1   : > { %636 = vrot.lane.b32.xlu1 %v3279_v26, %s3119_s27  ;;  %s3124_s27 = smov 16  }
 0x30b   : > { %v633_v31 = vpop.permute.xlu1 %632 }
 0x30f   : > { %v635_v36 = vpop.permute.xlu1 %634 }
 0x310   : > { %v642_v38 = vcombine.low %v631_v27, %v635_v36  ;;  %v643_v41 = vcombine.high %v631_v27, %v635_v36 }
 0x312   : > { %v650_v44 = vrot.slane %v642_v38, %v3286_v37  ;;  %v657_v48 = vrot.slane %v643_v41, %v3286_v37 }
 0x313   : > { %v637_v40 = vpop.permute.xlu1 %636 }
 0x314   : > { %v658_v42 = vcombine.low %v633_v31, %v637_v40  ;;  %v659_v43 = vcombine.high %v633_v31, %v637_v40 }
 0x316   : > { %v666_v45 = vrot.slane %v658_v42, %v3286_v37  ;;  %v673_v46 = vrot.slane %v659_v43, %v3286_v37  ;;  %v3122_v42 = vmov 0  }
 0x318   : > { %v674_v49 = vcombine.low %v650_v44, %v666_v45  ;;  %v675_v50 = vcombine.high %v650_v44, %v666_v45  ;;  %v690_v53 = vcombine.low %v657_v48, %v673_v46  ;;  %v691_v59 = vcombine.high %v657_v48, %v673_v46 }
 0x31a   : > { %v682_v51 = vrot.slane %v674_v49, %v3292_v47  ;;  %v689_v52 = vrot.slane %v675_v50, %v3292_v47  ;;  %v698_v58 = vrot.slane %v690_v53, %v3292_v47  ;;  %v705_v63 = vrot.slane %v691_v59, %v3292_v47 }
 0x31c   : > { %v710_v54 = vpack.c.bf16 %v682_v51, %v682_v51  ;;  %v706_v55 = vcombine.high %v682_v51, %v3114_v8  ;;  %v707_v57 = vcombine.high %v689_v52, %v3114_v8  ;;  %v712_v60 = vpack.c.bf16 %v689_v52, %v689_v52 }
 0x31d   : > { %v708_v62 = vcombine.high %v698_v58, %v3114_v8  ;;  %v714_v0 = vpack.c.bf16 %v698_v58, %v698_v58  ;;  %v709_v2 = vcombine.high %v705_v63, %v3114_v8  ;;  %v716_v3 = vpack.c.bf16 %v705_v63, %v705_v63 }
 0x31e   : > { %876 = vxpose.xlu1.c.b16.start.end [1/1] (short) (narrow) %v710_v54, 16  ;;  %v711_v56 = vpack.c.bf16 %v706_v55, %v706_v55  ;;  %v713_v61 = vpack.c.bf16 %v707_v57, %v707_v57 }
 0x31f   : > { %v715_v1 = vpack.c.bf16 %v708_v62, %v708_v62  ;;  %v717_v4 = vpack.c.bf16 %v709_v2, %v709_v2 }
 0x320   : > { %892 = vxpose.xlu0.c.b16.start.end [1/1] (short) (narrow) %v711_v56, 16 }
 0x322   : > { %908 = vxpose.xlu1.c.b16.start.end [1/1] (short) (narrow) %v712_v60, 16 }
 0x324   : > { %924 = vxpose.xlu0.c.b16.start.end [1/1] (short) (narrow) %v713_v61, 16 }
 0x326   : > { %940 = vxpose.xlu1.c.b16.start.end [1/1] (short) (narrow) %v714_v0, 16 }
 0x328   : > { %956 = vxpose.xlu0.c.b16.start.end [1/1] (short) (narrow) %v715_v1, 16 }
 0x32a   : > { %972 = vxpose.xlu1.c.b16.start.end [1/1] (short) (narrow) %v716_v3, 16 }
 0x32c   : > { %988 = vxpose.xlu0.c.b16.start.end [1/1] (short) (narrow) %v717_v4, 16 }
 0x32e   : > { %538 = vrot.lane.b32.xlu1 %v3304_v5, %s3117_s23 }
 0x332   : > { %544 = vrot.lane.b32.xlu1 %v3304_v5, %s3116_s22 }
 0x335   : > { %541 = vrot.lane.b32.xlu0 %v3304_v5, %s3118_s24  ;;  %s442_s24 = scalar_lea.vmem %s3608_s12, %s2848_s18 }
 0x384   : > { %v884_v6 = vpop.trf.xlu1 }
 0x386   : > { %v900_v7 = vpop.trf.xlu0 }
 0x388   : > { %v916_v9 = vpop.trf.xlu1 }
 0x38a   : > { %v932_v10 = vpop.trf.xlu0 }
 0x38c   : > { %v948_v11 = vpop.trf.xlu1 }
 0x38d   : > { %v1004_v13 = vcombine.low %v884_v6, %v948_v11 }
 0x38e   : > { %v964_v12 = vpop.trf.xlu0 }
 0x38f   : > { %v1038_v15 = vcombine.low %v900_v7, %v964_v12  ;;  %v1011_v18 = vrot.slane %v1004_v13, %v3286_v37 }
 0x390   : > { %v980_v14 = vpop.trf.xlu1 }
 0x391   : > { %v1012_v16 = vcombine.low %v916_v9, %v980_v14  ;;  %v1045_v22 = vrot.slane %v1038_v15, %v3286_v37 }
 0x392   : > { %v996_v17 = vpop.trf.xlu0 }
 0x393   : > { %v1019_v19 = vrot.slane %v1012_v16, %v3286_v37  ;;  %v1046_v21 = vcombine.low %v932_v10, %v996_v17 }
 0x395   : > { %v1020_v23 = vcombine.low %v1011_v18, %v1019_v19  ;;  %v1021_v27 = vcombine.high %v1011_v18, %v1019_v19  ;;  %v1053_v28 = vrot.slane %v1046_v21, %v3286_v37 }
 0x397   : > { %v1054_v29 = vcombine.low %v1045_v22, %v1053_v28  ;;  %v1055_v31 = vcombine.high %v1045_v22, %v1053_v28  ;;  %v1028_v32 = vrot.slane %v1020_v23, %v3292_v47  ;;  %v1035_v34 = vrot.slane %v1021_v27, %v3292_v47 }
 0x399   : > { %v1062_v35 = vrot.slane %v1054_v29, %v3292_v47  ;;  %v1069_v36 = vrot.slane %v1055_v31, %v3292_v47  ;;  %v1076_v44 = vshrl.u32 %v1028_v32, 16  ;;  %v1092_v45 = vshrl.u32 %v1035_v34, 16 }
 0x39a   : > { %v1036_v46 = vcombine.high %v1028_v32, %v3122_v42  ;;  %v1037_v53 = vcombine.high %v1035_v34, %v3122_v42 }
 0x39b   : > { %v1090_v38 = vpack.i.b16 %v1069_v36, %v1035_v34  ;;  %v1074_v39 = vpack.i.b16 %v1062_v35, %v1028_v32  ;;  %v1077_v40 = vshrl.u32 %v1062_v35, 16  ;;  %v1093_v41 = vshrl.u32 %v1069_v36, 16 }
 0x39c   : > { %v1070_v43 = vcombine.high %v1062_v35, %v3122_v42  ;;  %v1071_v51 = vcombine.high %v1069_v36, %v3122_v42  ;;  %v1084_v52 = vshrl.u32 %v1036_v46, 16  ;;  %v1100_v57 = vshrl.u32 %v1037_v53, 16 }
 0x39d   : > { %1168 = vxpose.xlu0.c.b16.start.end [1/1] (short) (narrow) %v1090_v38, 16  ;;  %1104 = vxpose.xlu1.c.b16.start.end [1/1] (short) (narrow) %v1074_v39, 16  ;;  %v1078_v48 = vpack.i.b16 %v1077_v40, %v1076_v44  ;;  %v1094_v49 = vpack.i.b16 %v1093_v41, %v1092_v45 }
 0x39e   : > { %v1085_v50 = vshrl.u32 %v1070_v43, 16  ;;  %v1082_v54 = vpack.i.b16 %v1070_v43, %v1036_v46  ;;  %v1101_v56 = vshrl.u32 %v1071_v51, 16  ;;  %v1098_v58 = vpack.i.b16 %v1071_v51, %v1037_v53 }
 0x3a0   : > { %v1086_v55 = vpack.i.b16 %v1085_v50, %v1084_v52  ;;  %v1102_v59 = vpack.i.b16 %v1101_v56, %v1100_v57  ;;  %v539_v60 = vpop.permute.xlu1 %538 }
 0x3a1   : > { %1120 = vxpose.xlu0.c.b16.start.end [1/1] (short) (narrow) %v1078_v48, 16  ;;  %1184 = vxpose.xlu1.c.b16.start.end [1/1] (short) (narrow) %v1094_v49, 16 }
 0x3a4   : > { %v545_v62 = vpop.permute.xlu1 %544 }
 0x3a5   : > { %1136 = vxpose.xlu0.c.b16.start.end [1/1] (short) (narrow) %v1082_v54, 16  ;;  %1152 = vxpose.xlu1.c.b16.start.end [1/1] (short) (narrow) %v1086_v55, 16  ;;  %v563_v1 = vcombine.low %v539_v60, %v545_v62  ;;  %v564_v2 = vcombine.high %v539_v60, %v545_v62 }
 0x3a7   : > { %v542_v61 = vpop.permute.xlu0 %541 }
 0x3a8   : > { %v547_v63 = vcombine.low %v3304_v5, %v542_v61  ;;  %v548_v0 = vcombine.high %v3304_v5, %v542_v61 }
 0x3a9   : > { %1200 = vxpose.xlu0.c.b16.start.end [1/1] (short) (narrow) %v1098_v58, 16  ;;  %1216 = vxpose.xlu1.c.b16.start.end [1/1] (short) (narrow) %v1102_v59, 16 }
 0x3aa   : > { %v555_v3 = vrot.slane %v547_v63, %v3286_v37  ;;  %v562_v4 = vrot.slane %v548_v0, %v3286_v37 }
 0x3ad   : > { %720 = vrot.lane.b32.xlu1 %v3273_v24, %s3123_s30  ;;  %v571_v24 = vrot.slane %v563_v1, %v3286_v37 }
 0x3af   : > { %v580_v6 = vcombine.high %v555_v3, %v571_v24 }
 0x3b1   : > { %722 = vrot.lane.b32.xlu1 %v3276_v25, %s3123_s30  ;;  %v578_v25 = vrot.slane %v564_v2, %v3286_v37  ;;  %v594_v10 = vrot.slane %v580_v6, %v3292_v47 }
 0x3b2   : > { %718 = vrot.lane.b32.xlu0 %v3264_v20, %s3123_s30  ;;  %v579_v20 = vcombine.low %v555_v3, %v571_v24 }
 0x3b3   : > { %v596_v7 = vcombine.high %v562_v4, %v578_v25  ;;  %v612_v15 = vcombine.high %v594_v10, %v3114_v8 }
 0x3b4   : > { %v587_v9 = vrot.slane %v579_v20, %v3292_v47 }
 0x3b5   : > { %v610_v11 = vrot.slane %v596_v7, %v3292_v47 }
 0x3b6   : > { %724 = vrot.lane.b32.xlu0 %v3279_v26, %s3123_s30  ;;  %v595_v26 = vcombine.low %v562_v4, %v578_v25  ;;  %v611_v14 = vcombine.high %v587_v9, %v3114_v8  ;;  %s3125_s30 = smov 8  }
 0x3b7   : > { %v614_v17 = vcombine.high %v610_v11, %v3114_v8  ;;  %v2856_v27 = vpack.c.bf16 %v610_v11, %v594_v10 }
 0x3b8   : > { %v603_v5 = vrot.slane %v595_v26, %v3292_v47 }
 0x3b9   : > { %v2858_v22 = vpack.c.bf16 %v614_v17, %v612_v15  ;;  %v829_v38 = vrot.slane %v2856_v27, %v3286_v37 }
 0x3ba   : > { %v613_v16 = vcombine.high %v603_v5, %v3114_v8  ;;  %v2855_v23 = vpack.c.bf16 %v603_v5, %v587_v9 }
 0x3bb   : > { %v854_v32 = vrot.slane %v2858_v22, %v3286_v37 }
 0x3bc   : > { %v2857_v21 = vpack.c.bf16 %v613_v16, %v611_v14  ;;  %v821_v36 = vrot.slane %v2855_v23, %v3286_v37  ;;  %v809_v14 = vand.u32 127, %v552_v30 }
 0x3be   : > { %v846_v31 = vrot.slane %v2857_v21, %v3286_v37  ;;  %v830_v50 = vcombine.low %v821_v36, %v829_v38  ;;  %v810_v15 = vsub.s32 %v3283_v33, %v809_v14  ;;  %vm812_vm5 = vcmp.le.s32.totalorder %v809_v14, %v3283_v33 }
 0x3c0   : > { %v855_v44 = vcombine.low %v846_v31, %v854_v32  ;;  %v837_v56 = vrot.slane %v830_v50, %v3292_v47  ;;  %vm811_vm4 = vcmp.le.s32.totalorder %v810_v15, 2 }
 0x3c1   : > { %vm3381_vm6 = vmand %vm811_vm4, %vm812_vm5 }
 0x3c2   : > { %v862_v55 = vrot.slane %v855_v44, %v3292_v47  ;;  %v838_v4 = vcombine.high %v837_v56, %v3122_v42  ;;  %v867_v7 = vshrl.u32 %v837_v56, 16 }
 0x3c4   : > { %v863_v0 = vcombine.high %v862_v55, %v3122_v42  ;;  %v866_v3 = vpack.i.b16 %v862_v55, %v837_v56  ;;  %v868_v26 = vshrl.u32 %v862_v55, 16 }
 0x3c6   : > { %v872_v6 = vpack.i.b16 %v863_v0, %v838_v4  ;;  %v869_v10 = vpack.i.b16 %v868_v26, %v867_v7  ;;  %v874_v11 = vshrl.u32 %v863_v0, 16 }
 0x403   : > { %v1176_v12 = vpop.trf.xlu0  ;;  %v1112_v13 = vpop.trf.xlu1 }
 0x404   : > { %v1232_v34 = vcombine.low %v1112_v13, %v1176_v12  ;;  %v873_v12 = vshrl.u32 %v838_v4, 16 }
 0x406   : > { %v1239_v45 = vrot.slane %v1232_v34, %v3286_v37  ;;  %v875_v13 = vpack.i.b16 %v874_v11, %v873_v12 }
 0x407   : > { %v1128_v18 = vpop.trf.xlu0  ;;  %v1192_v19 = vpop.trf.xlu1 }
 0x408   : > { %v1257_v35 = vcombine.low %v1128_v18, %v1192_v19 }
 0x40a   : > { %v1264_v46 = vrot.slane %v1257_v35, %v3286_v37 }
 0x40b   : > { %v1144_v28 = vpop.trf.xlu0  ;;  %v1160_v29 = vpop.trf.xlu1 }
 0x40f   : > { %v1208_v39 = vpop.trf.xlu0  ;;  %v1224_v40 = vpop.trf.xlu1 }
 0x410   : > { %v1240_v41 = vcombine.low %v1144_v28, %v1208_v39  ;;  %v1265_v43 = vcombine.low %v1160_v29, %v1224_v40 }
 0x412   : > { %v1247_v48 = vrot.slane %v1240_v41, %v3286_v37  ;;  %v1272_v49 = vrot.slane %v1265_v43, %v3286_v37 }
 0x414   : > { %v1248_v51 = vcombine.low %v1239_v45, %v1247_v48  ;;  %v1273_v52 = vcombine.low %v1264_v46, %v1272_v49 }
 0x416   : > { %v1255_v53 = vrot.slane %v1248_v51, %v3292_v47  ;;  %v1280_v54 = vrot.slane %v1273_v52, %v3292_v47 }
 0x418   : > { %v1284_v57 = vpack.i.b16 %v1280_v54, %v1255_v53  ;;  %v1256_v58 = vcombine.high %v1255_v53, %v3122_v42  ;;  %v1281_v59 = vcombine.high %v1280_v54, %v3122_v42  ;;  %v1285_v60 = vshrl.u32 %v1255_v53, 16 }
 0x419   : > { %v1286_v61 = vshrl.u32 %v1280_v54, 16 }
 0x41a   : > { %v1300_v62 = vsel %vm1298_vm2, %v1284_v57, 0  ;;  %v1290_v63 = vpack.i.b16 %v1281_v59, %v1256_v58  ;;  %v1291_v24 = vshrl.u32 %v1256_v58, 16  ;;  %v1292_v25 = vshrl.u32 %v1281_v59, 16 }
 0x41b   : > { %2935 = vmatpush3.bf16.msra.mxu1 %v1300_v62  ;;  %v1287_v1 = vpack.i.b16 %v1286_v61, %v1285_v60 }
 0x41c   : > { %v1392_v2 = vsel %vm1298_vm2, %v1290_v63, 0  ;;  %2940 = vmatprep.subr.bf16.mxu1 %v3114_v8  ;;  %v1293_v9 = vpack.i.b16 %v1292_v25, %v1291_v24 }
 0x41d   : > { %2947 = vmatpush3.bf16.msra.mxu0 %v1392_v2  ;;  %v1346_v20 = vsel %vm1298_vm2, %v1287_v1, 0 }
 0x41e   : > { %2937 = vmatmul.mubr.msk.bf16.vlgmr.msra.gmra.mrb[4].mxu1 %vm1294_vm3, %v866_v3  ;;  %2958 = vmatprep.subr.bf16.mxu0 %v3114_v8  ;;  %v1438_v5 = vsel %vm1298_vm2, %v1293_v9, 0 }
 0x41f   : > { %2941 = vmatpush3.bf16.msra.mxu1 %v1346_v20  ;;  %2942 = vmatprep.mubr.msk.bf16.mxu1 %vm3115_vm1, %v3114_v8  ;;  %v721_v48 = vpop.permute.xlu1 %720 }
 0x420   : > { %2949 = vmatmul.mubr.msk.bf16.vlgmr.msra.gmra.mrb[0].mxu0 %vm1294_vm3, %v872_v6  ;;  %2952 = vmatprep.subr.bf16.mxu1 %v3114_v8 }
 0x421   : > { %2960 = vmatprep.mubr.msk.bf16.mxu0 %vm3115_vm1, %v3114_v8 }
 0x423   : > { %v723_v50 = vpop.permute.xlu1 %722 }
 0x424   : > { %v719_v46 = vpop.permute.xlu0 %718 }
 0x425   : > { %v730_v52 = vcombine.low %v719_v46, %v723_v50  ;;  %v731_v58 = vcombine.high %v719_v46, %v723_v50 }
 0x426   : > { %2943 = vmatmul.mubr.msk.bf16.vlgmr.msra.gmra.mrb[8].mxu1 %vm1294_vm3, %v869_v10 }
 0x427   : > { %2953 = vmatpush3.bf16.msra.mxu1 %v1438_v5  ;;  %2954 = vmatprep.mubr.msk.bf16.mxu1 %vm3115_vm1, %v3114_v8  ;;  %v738_v54 = vrot.slane %v730_v52, %v3286_v37  ;;  %v745_v62 = vrot.slane %v731_v58, %v3286_v37 }
 0x428   : > { %2964 = vmatprep.subr.bf16.mxu1 %v3114_v8  ;;  %v725_v49 = vpop.permute.xlu0 %724 }
 0x429   : > { %v746_v51 = vcombine.low %v721_v48, %v725_v49  ;;  %v747_v56 = vcombine.high %v721_v48, %v725_v49 }
 0x42b   : > { %v754_v53 = vrot.slane %v746_v51, %v3286_v37  ;;  %v761_v59 = vrot.slane %v747_v56, %v3286_v37 }
 0x42d   : > { %v762_v55 = vcombine.low %v738_v54, %v754_v53  ;;  %v763_v61 = vcombine.high %v738_v54, %v754_v53  ;;  %v778_v1 = vcombine.low %v745_v62, %v761_v59  ;;  %v779_v24 = vcombine.high %v745_v62, %v761_v59 }
 0x42e   : > { %2955 = vmatmul.mubr.msk.bf16.vlgmr.msra.gmra.mrb[12].mxu1 %vm1294_vm3, %v875_v13 }
 0x42f   : > { %2966 = vmatprep.mubr.msk.bf16.mxu1 %vm3115_vm1, %v3114_v8  ;;  %v770_v57 = vrot.slane %v762_v55, %v3292_v47  ;;  %v777_v0 = vrot.slane %v763_v61, %v3292_v47  ;;  %v786_v4 = vrot.slane %v778_v1, %v3292_v47  ;;  %v793_v20 = vrot.slane %v779_v24, %v3292_v47 }
 0x431   : > { %v794_v60 = vcombine.high %v770_v57, %v3114_v8  ;;  %v800_v2 = vpack.c.bf16 %v777_v0, %v777_v0  ;;  %v798_v3 = vpack.c.bf16 %v770_v57, %v770_v57  ;;  %v802_v25 = vpack.c.bf16 %v786_v4, %v786_v4 }
 0x432   : > { %v804_v6 = vpack.c.bf16 %v793_v20, %v793_v20  ;;  %v795_v7 = vcombine.high %v777_v0, %v3114_v8  ;;  %v796_v10 = vcombine.high %v786_v4, %v3114_v8  ;;  %v797_v11 = vcombine.high %v793_v20, %v3114_v8 }
 0x433   : > { %v799_v63 = vpack.c.bf16 %v794_v60, %v794_v60 }
 0x434   : > { %v801_v9 = vpack.c.bf16 %v795_v7, %v795_v7  ;;  %v803_v5 = vpack.c.bf16 %v796_v10, %v796_v10  ;;  %v805_v12 = vpack.c.bf16 %v797_v11, %v797_v11 }
 0x4f1   : > { %v1336_v17 = vpop.f32.mrb[4].mxu1 }
 0x4f2   : > { %v3387_v18 = vsel %vm3381_vm6, %v1336_v17, -1e+30  ;;  %v2938_v19 = vpop.f32.mrb[5].mxu1 }
 0x4f3   : > { %v1339_v21 = vpop.f32.mrb[6].mxu1  ;;  %v1428_v22 = vpop.f32.mrb[0].mxu0  ;;  %v1486_v30 = vsel %vm1294_vm3, %v3387_v18, -inf }
 0x4f4   : > { %v3393_v23 = vsel %vm3381_vm6, %v1428_v22, -1e+30  ;;  %v2950_v33 = vpop.f32.mrb[1].mxu0  ;;  %1487 = vmax.xlane.f32.xlu0 %v1486_v30  ;;  %v2939_v27 = vpop.f32.mrb[7].mxu1 }
 0x4f5   : > { %v1431_v28 = vpop.f32.mrb[2].mxu0  ;;  %v1492_v31 = vsel %vm1294_vm3, %v3393_v23, -inf }
 0x4f6   : > { %v2951_v29 = vpop.f32.mrb[3].mxu0 }
 0x4f8   : > { %1493 = vmax.xlane.f32.xlu0 %v1492_v31 }
 0x4f9   : > { %v1382_v32 = vpop.f32.mrb[8].mxu1 }
 0x4fa   : > { %v3399_v34 = vsel %vm3381_vm6, %v1382_v32, -1e+30  ;;  %v2944_v35 = vpop.f32.mrb[9].mxu1 }
 0x4fb   : > { %v1385_v36 = vpop.f32.mrb[10].mxu1  ;;  %v1489_v38 = vsel %vm1294_vm3, %v3399_v34, -inf }
 0x4fc   : > { %1490 = vmax.xlane.f32.xlu1 %v1489_v38  ;;  %v2945_v39 = vpop.f32.mrb[11].mxu1 }
 0x501   : > { %v1474_v40 = vpop.f32.mrb[12].mxu1 }
 0x502   : > { %v3405_v41 = vsel %vm3381_vm6, %v1474_v40, -1e+30  ;;  %v2956_v43 = vpop.f32.mrb[13].mxu1 }
 0x503   : > { %v1477_v44 = vpop.f32.mrb[14].mxu1  ;;  %v1495_v26 = vsel %vm1294_vm3, %v3405_v41, -inf }
 0x504   : > { %v2957_v45 = vpop.f32.mrb[15].mxu1 }
 0x525   : > { %1555 = vxpose.xlu0.c.b16.start.end [1/1] (short) (narrow) %v799_v63, 16 }
 0x529   : > { %1571 = vxpose.xlu0.c.b16.start.end [1/1] (short) (narrow) %v800_v2, 16  ;;  %1539 = vxpose.xlu1.c.b16.start.end [1/1] (short) (narrow) %v798_v3, 16 }
 0x52d   : > { %1603 = vxpose.xlu0.c.b16.start.end [1/1] (short) (narrow) %v802_v25, 16 }
 0x531   : > { %1635 = vxpose.xlu0.c.b16.start.end [1/1] (short) (narrow) %v804_v6, 16 }
 0x536   : > { %1496 = vmax.xlane.f32.xlu1 %v1495_v26 }
 0x563   : > { %1587 = vxpose.xlu1.c.b16.start.end [1/1] (short) (narrow) %v801_v9, 16 }
 0x567   : > { %1619 = vxpose.xlu1.c.b16.start.end [1/1] (short) (narrow) %v803_v5, 16 }
 0x56b   : > { %1651 = vxpose.xlu1.c.b16.start.end [1/1] (short) (narrow) %v805_v12, 16 }
 0x581   : > { %v1488_v13 = vpop.xlane.xlu0 %1487 }
 0x582   : > { %v1498_v55 = vsub.f32 %v3387_v18, %v1488_v13 }
 0x584   : > { %v1502_v63 = vmul.f32 1.442695, %v1498_v55 }
 0x585   : > { %v1494_v14 = vpop.xlane.xlu0 %1493 }
 0x586   : > { %v1500_v0 = vsub.f32 %v3393_v23, %v1494_v14  ;;  %3071 = vpow2.f32 %v1502_v63 }
 0x588   : > { %v1506_v25 = vmul.f32 1.442695, %v1500_v0 }
 0x589   : > { %v1491_v17 = vpop.xlane.xlu1 %1490 }
 0x58a   : > { %v1499_v59 = vsub.f32 %v3399_v34, %v1491_v17 }
 0x58b   : > { %v1563_v15 = vpop.trf.xlu0 }
 0x58c   : > { %v1504_v3 = vmul.f32 1.442695, %v1499_v59 }
 0x58e   : > { %3073 = vpow2.f32 %v1504_v3 }
 0x58f   : > { %v1579_v16 = vpop.trf.xlu0  ;;  %v1547_v19 = vpop.trf.xlu1  ;;  %3075 = vpow2.f32 %v1506_v25 }
 0x590   : > { %v3072_v6 = vpop.eup %3071 }
 0x591   : > { %v1510_v26 = vsel %vm1294_vm3, %v3072_v6, 0.0 }
 0x593   : > { %v1611_v21 = vpop.trf.xlu0 }
 0x594   : > { %v1667_v33 = vcombine.low %v1547_v19, %v1611_v21 }
 0x596   : > { %v1674_v29 = vrot.slane %v1667_v33, %v3286_v37 }
 0x597   : > { %v1643_v30 = vpop.trf.xlu0 }
 0x598   : > { %v1675_v27 = vcombine.low %v1579_v16, %v1643_v30  ;;  %v3074_v23 = vpop.eup %3073 }
 0x599   : > { %v3076_v7 = vpop.eup %3075 }
 0x59a   : > { %v1682_v31 = vrot.slane %v1675_v27, %v3286_v37  ;;  %v1516_v10 = vsel %vm1294_vm3, %v3076_v7, 0.0 }
 0x59c   : > { %v1683_v36 = vcombine.low %v1674_v29, %v1682_v31  ;;  %v1684_v49 = vcombine.high %v1674_v29, %v1682_v31 }
 0x59e   : > { %v1691_v44 = vrot.slane %v1683_v36, %v3292_v47  ;;  %v1698_v62 = vrot.slane %v1684_v49, %v3292_v47 }
 0x5a0   : > { %v1739_v50 = vshrl.u32 %v1691_v44, 16  ;;  %v1699_v53 = vcombine.high %v1691_v44, %v3122_v42  ;;  %v1755_v24 = vshrl.u32 %v1698_v62, 16  ;;  %v1700_v12 = vcombine.high %v1698_v62, %v3122_v42 }
 0x5a2   : > { %v1747_v61 = vshrl.u32 %v1699_v53, 16 }
 0x5c3   : > { %v1497_v22 = vpop.xlane.xlu1 %1496 }
 0x5c4   : > { %v1501_v18 = vsub.f32 %v3405_v41, %v1497_v22  ;;  %v1513_v41 = vsel %vm1294_vm3, %v3074_v23, 0.0 }
 0x5c6   : > { %v1508_v20 = vmul.f32 1.442695, %v1501_v18 }
 0x5c8   : > { %3077 = vpow2.f32 %v1508_v20 }
 0x5c9   : > { %v1595_v28 = vpop.trf.xlu1 }
 0x5cd   : > { %v1627_v32 = vpop.trf.xlu1 }
 0x5ce   : > { %v1701_v35 = vcombine.low %v1563_v15, %v1627_v32  ;;  %v1763_v15 = vshrl.u32 %v1700_v12, 16 }
 0x5d0   : > { %v1708_v40 = vrot.slane %v1701_v35, %v3286_v37 }
 0x5d1   : > { %v1659_v38 = vpop.trf.xlu1 }
 0x5d2   : > { %v1709_v39 = vcombine.low %v1595_v28, %v1659_v38  ;;  %v3078_v9 = vpop.eup %3077 }
 0x5d3   : > { %v1519_v5 = vsel %vm1294_vm3, %v3078_v9, 0.0 }
 0x5d4   : > { %v1716_v43 = vrot.slane %v1709_v39, %v3286_v37 }
 0x5d6   : > { %v1717_v45 = vcombine.low %v1708_v40, %v1716_v43  ;;  %v1718_v46 = vcombine.high %v1708_v40, %v1716_v43 }
 0x5d8   : > { %v1725_v48 = vrot.slane %v1717_v45, %v3292_v47  ;;  %v1732_v58 = vrot.slane %v1718_v46, %v3292_v47 }
 0x5da   : > { %v1737_v51 = vpack.i.b16 %v1725_v48, %v1691_v44  ;;  %v1740_v52 = vshrl.u32 %v1725_v48, 16  ;;  %v1733_v54 = vcombine.high %v1725_v48, %v3122_v42  ;;  %v1756_v2 = vshrl.u32 %v1732_v58, 16 }
 0x5db   : > { %v1753_v4 = vpack.i.b16 %v1732_v58, %v1698_v62  ;;  %v1734_v11 = vcombine.high %v1732_v58, %v3122_v42 }
 0x5dc   : > { %1767 = vxpose.xlu0.c.b16.start.end [1/1] (short) (narrow) %v1737_v51, 16  ;;  %v1741_v56 = vpack.i.b16 %v1740_v52, %v1739_v50  ;;  %v1748_v57 = vshrl.u32 %v1733_v54, 16  ;;  %v1745_v60 = vpack.i.b16 %v1733_v54, %v1699_v53  ;;  %v1757_v34 = vpack.i.b16 %v1756_v2, %v1755_v24 }
 0x5dd   : > { %v1764_v13 = vshrl.u32 %v1734_v11, 16  ;;  %v1761_v14 = vpack.i.b16 %v1734_v11, %v1700_v12 }
 0x5de   : > { %1783 = vxpose.xlu1.c.b16.start.end [1/1] (short) (narrow) %v1741_v56, 16  ;;  %v1749_v1 = vpack.i.b16 %v1748_v57, %v1747_v61 }
 0x5df   : > { %v1765_v16 = vpack.i.b16 %v1764_v13, %v1763_v15 }
 0x5e0   : > { %1799 = vxpose.xlu0.c.b16.start.end [1/1] (short) (narrow) %v1745_v60, 16 }
 0x5e2   : > { %1815 = vxpose.xlu1.c.b16.start.end [1/1] (short) (narrow) %v1749_v1, 16 }
 0x5e4   : > { %1831 = vxpose.xlu0.c.b16.start.end [1/1] (short) (narrow) %v1753_v4, 16 }
 0x5e6   : > { %1847 = vxpose.xlu1.c.b16.start.end [1/1] (short) (narrow) %v1757_v34, 16 }
 0x5f1   : > { %1511 = vadd.xlane.f32.xlu0 %v1510_v26 }
 0x5f3   : > { %1514 = vadd.xlane.f32.xlu1 %v1513_v41 }
 0x5f5   : > { %1517 = vadd.xlane.f32.xlu0 %v1516_v10 }
 0x5f7   : > { %1520 = vadd.xlane.f32.xlu1 %v1519_v5 }
 0x622   : > { %1863 = vxpose.xlu0.c.b16.start.end [1/1] (short) (narrow) %v1761_v14, 16 }
 0x624   : > { %1879 = vxpose.xlu1.c.b16.start.end [1/1] (short) (narrow) %v1765_v16, 16 }
 0x642   : > { %v1775_v17 = vpop.trf.xlu0 }
 0x644   : > { %v1791_v19 = vpop.trf.xlu1 }
 0x646   : > { %v1807_v21 = vpop.trf.xlu0 }
 0x648   : > { %v1823_v22 = vpop.trf.xlu1 }
 0x64a   : > { %v1839_v30 = vpop.trf.xlu0 }
 0x64b   : > { %v1895_v32 = vcombine.low %v1775_v17, %v1839_v30 }
 0x64c   : > { %v1855_v33 = vpop.trf.xlu1 }
 0x64d   : > { %v1920_v38 = vcombine.low %v1791_v19, %v1855_v33  ;;  %v1902_v45 = vrot.slane %v1895_v32, %v3286_v37 }
 0x64f   : > { %v1927_v52 = vrot.slane %v1920_v38, %v3286_v37 }
 0x67e   : > { %v1512_v27 = vpop.xlane.xlu0 %1511 }
 0x67f   : > { %3079 = vrcp.f32 %v1512_v27 }
 0x680   : > { %v1515_v28 = vpop.xlane.xlu1 %1514 }
 0x681   : > { %3081 = vrcp.f32 %v1515_v28 }
 0x682   : > { %v1518_v29 = vpop.xlane.xlu0 %1517 }
 0x683   : > { %3083 = vrcp.f32 %v1518_v29 }
 0x684   : > { %v1521_v31 = vpop.xlane.xlu1 %1520 }
 0x685   : > { %3085 = vrcp.f32 %v1521_v31 }
 0x688   : > { %v1871_v35 = vpop.trf.xlu0 }
 0x689   : > { %v3080_v36 = vpop.eup %3079  ;;  %v1903_v39 = vcombine.low %v1807_v21, %v1871_v35 }
 0x68a   : > { %v1887_v40 = vpop.trf.xlu1  ;;  %v1526_v43 = vmul.f32 %v3080_v36, %v3072_v6 }
 0x68b   : > { %v3082_v44 = vpop.eup %3081  ;;  %v1910_v46 = vrot.slane %v1903_v39, %v3286_v37  ;;  %v1928_v48 = vcombine.low %v1823_v22, %v1887_v40 }
 0x68c   : > { %v1530_v49 = vpack.c.bf16 %v1526_v43, %v1526_v43  ;;  %v1527_v50 = vmul.f32 %v3082_v44, %v3074_v23 }
 0x68d   : > { %v3084_v51 = vpop.eup %3083  ;;  %v1911_v53 = vcombine.low %v1902_v45, %v1910_v46  ;;  %v1935_v54 = vrot.slane %v1928_v48, %v3286_v37 }
 0x68e   : > { %1535 = vst.msk [vmem:[%s3446_s25] sm:$0xf] %vm1534_vm7, %v1530_v49  ;;  %v1961_v55 = vsel %vm1294_vm3, %v1530_v49, 0  ;;  %v1531_v56 = vpack.c.bf16 %v1527_v50, %v1527_v50  ;;  %v1528_v57 = vmul.f32 %v3084_v51, %v3076_v7  ;;  %v3057_v49 = vld [vmem:[%s3600_s4] sm:$0xff]  }
 0x68f   : > { %v3086_v58 = vpop.eup %3085  ;;  %v1918_v59 = vrot.slane %v1911_v53, %v3292_v47  ;;  %v1936_v60 = vcombine.low %v1927_v52, %v1935_v54  ;;  %2959 = vmatpush3.bf16.xpose.msra.mxu0 %v1961_v55 }
 0x690   : > { %1536 = vst.msk [vmem:[%s3446_s25 + $0x4] sm:$0xf] %vm1534_vm7, %v1531_v56  ;;  %v2007_v61 = vsel %vm1294_vm3, %v1531_v56, 0  ;;  %2970 = vmatprep.subr.bf16.mxu0 %v3114_v8  ;;  %v1532_v62 = vpack.c.bf16 %v1528_v57, %v1528_v57  ;;  %v1529_v63 = vmul.f32 %v3086_v58, %v3078_v9  ;;  %v3058_v58 = vld [vmem:[%s3600_s4 + $0x8] sm:$0xff]  }
 0x691   : > { %v1943_v0 = vrot.slane %v1936_v60, %v3292_v47  ;;  %2965 = vmatpush3.bf16.xpose.msra.mxu1 %v2007_v61  ;;  %v1948_v2 = vshrl.u32 %v1918_v59, 16  ;;  %v1919_v34 = vcombine.high %v1918_v59, %v3122_v42 }
 0x692   : > { %1537 = vst.msk [vmem:[%s3446_s25 + $0x8] sm:$0xf] %vm1534_vm7, %v1532_v62  ;;  %2976 = vmatprep.subr.bf16.mxu1 %v3114_v8  ;;  %v1533_v1 = vpack.c.bf16 %v1529_v63, %v1529_v63  ;;  %v2053_v25 = vsel %vm1294_vm3, %v1532_v62, 0 }
 0x693   : > { %v1947_v3 = vpack.i.b16 %v1943_v0, %v1918_v59  ;;  %v1949_v18 = vshrl.u32 %v1943_v0, 16  ;;  %v1944_v24 = vcombine.high %v1943_v0, %v3122_v42  ;;  %v1954_v23 = vshrl.u32 %v1919_v34, 16 }
 0x694   : > { %1538 = vst.msk [vmem:[%s3446_s25 + $0xc] sm:$0xf] %vm1534_vm7, %v1533_v1  ;;  %v2099_v20 = vsel %vm1294_vm3, %v1533_v1, 0 }
 0x695   : > { %v1950_v4 = vpack.i.b16 %v1949_v18, %v1948_v2  ;;  %v1955_v6 = vshrl.u32 %v1944_v24, 16  ;;  %v1953_v26 = vpack.i.b16 %v1944_v24, %v1919_v34 }
 0x696   : > { %2961 = vmatmul.mubr.msk.bf16.vlgmr.msra.gmra.mrb[4].mxu0 %vm1294_vm3, %v1947_v3 }
 0x697   : > { %2971 = vmatpush3.bf16.xpose.msra.mxu0 %v2053_v25  ;;  %2972 = vmatprep.mubr.msk.bf16.mxu0 %vm3115_vm1, %v3114_v8  ;;  %v1956_v7 = vpack.i.b16 %v1955_v6, %v1954_v23 }
 0x698   : > { %2967 = vmatmul.mubr.msk.bf16.vlgmr.msra.gmra.mrb[16].mxu1 %vm1294_vm3, %v1950_v4  ;;  %2982 = vmatprep.subr.bf16.mxu0 %v3114_v8 }
 0x699   : > { %2977 = vmatpush3.bf16.xpose.msra.mxu1 %v2099_v20  ;;  %2978 = vmatprep.mubr.msk.bf16.mxu1 %vm3115_vm1, %v3114_v8 }
 0x69a   : > { %2990 = vmatprep.subr.bf16.mxu1 %v3114_v8 }
 0x69e   : > { %2973 = vmatmul.mubr.msk.bf16.vlgmr.msra.gmra.mrb[8].mxu0 %vm1294_vm3, %v1953_v26 }
 0x69f   : > { %2986 = vmatprep.mubr.msk.bf16.mxu0 %vm3115_vm1, %v3114_v8  ;;  %2983 = vmatpush3.bf16.msra.mxu0 %v3057_v49 }
 0x6a0   : > { %2979 = vmatmul.mubr.msk.bf16.vlgmr.msra.gmra.mrb[20].mxu1 %vm1294_vm3, %v1956_v7  ;;  %2984 = vmatprep.subr.bf16.mxu0 %v3114_v8 }
 0x6a1   : > { %2994 = vmatprep.mubr.msk.bf16.mxu1 %vm3115_vm1, %v3114_v8 }
 0x6a3   : > { %2985 = vmatpush3.bf16.msra.mxu0 %v3058_v58 }
 0x6a4   : > { %2998 = vmatprep.subr.bf16.mxu0 %v3114_v8 }
 0x769   : > { %v1997_v42 = vpop.f32.mrb[4].mxu0 }
 0x76a   : > { %2141 = vxpose.xlu0.b32.start.end [1/1] (short) (narrow) %v1997_v42, 8  ;;  %v2962_v41 = vpop.f32.mrb[5].mxu0 }
 0x76b   : > { %v2000_v9 = vpop.f32.mrb[6].mxu0  ;;  %v2043_v10 = vpop.f32.mrb[16].mxu1 }
 0x76c   : > { %v2963_v5 = vpop.f32.mrb[7].mxu0  ;;  %2173 = vxpose.xlu1.b32.start.end [1/1] (short) (narrow) %v2043_v10, 8  ;;  %v2968_v11 = vpop.f32.mrb[17].mxu1  ;;  %v2869_v9 = vld [vmem:[%s3601_s5] ss:$0 sm:$0xff] }
 0x76d   : > { %v2046_v12 = vpop.f32.mrb[18].mxu1 }
 0x76e   : > { %v2969_v13 = vpop.f32.mrb[19].mxu1 }
 0x76f   : > { %v3089_v13 = vld [vmem:[%s3236_s21] sm:$0xff] }
 0x771   : > { %v2089_v14 = vpop.f32.mrb[8].mxu0 }
 0x772   : > { %2205 = vxpose.xlu0.b32.start.end [1/1] (short) (narrow) %v2089_v14, 8  ;;  %v2974_v15 = vpop.f32.mrb[9].mxu0 }
 0x773   : > { %v2092_v16 = vpop.f32.mrb[10].mxu0  ;;  %v2135_v17 = vpop.f32.mrb[20].mxu1 }
 0x774   : > { %v2975_v19 = vpop.f32.mrb[11].mxu0  ;;  %v2980_v21 = vpop.f32.mrb[21].mxu1 }
 0x775   : > { %v2138_v22 = vpop.f32.mrb[22].mxu1 }
 0x776   : > { %2237 = vxpose.xlu0.b32.start.end [1/1] (short) (narrow) %v2135_v17, 8  ;;  %v2981_v30 = vpop.f32.mrb[23].mxu1 }
 0x7ea   : > { %v2157_v33 = vpop.trf.xlu0 }
 0x7ec   : > { %v2189_v28 = vpop.trf.xlu1 }
 0x7f2   : > { %v2221_v27 = vpop.trf.xlu0 }
 0x7f3   : > { %v2269_v29 = vcombine.low %v2157_v33, %v2221_v27  ;;  %v2270_v31 = vcombine.high %v2157_v33, %v2221_v27  ;;  %v3059_v33 = vld [vmem:[%s3604_s8] sm:$0xff]   ;;  %v3060_v27 = vld [vmem:[%s3604_s8 + $0x8] sm:$0xff]  }
 0x7f4   : > { %2991 = vmatpush3.bf16.msra.mxu1 %v3059_v33 }
 0x7f5   : > { %v2277_v38 = vrot.slane %v2269_v29, %v3286_v37  ;;  %v2284_v39 = vrot.slane %v2270_v31, %v3286_v37  ;;  %2992 = vmatprep.subr.bf16.mxu1 %v3114_v8  ;;  %v3062_v29 = vld [vmem:[%s3606_s10 + $0x8] sm:$0xff]   ;;  %v3063_v31 = vld [vmem:[%s3606_s10 + $0x10] sm:$0xff]  }
 0x7f6   : > { %v2253_v32 = vpop.trf.xlu0 }
 0x7f7   : > { %v2285_v35 = vcombine.low %v2189_v28, %v2253_v32  ;;  %v2286_v36 = vcombine.high %v2189_v28, %v2253_v32  ;;  %v3061_v28 = vld [vmem:[%s3606_s10] sm:$0xff]   ;;  %v3064_v32 = vld [vmem:[%s3606_s10 + $0x18] sm:$0xff]  }
 0x7f8   : > { %2993 = vmatpush3.bf16.msra.mxu1 %v3060_v27 }
 0x7f9   : > { %v2293_v40 = vrot.slane %v2285_v35, %v3286_v37  ;;  %v2300_v43 = vrot.slane %v2286_v36, %v3286_v37  ;;  %v3065_v35 = vld [vmem:[%s3606_s10 + $0x20] sm:$0xff]   ;;  %v3066_v36 = vld [vmem:[%s3606_s10 + $0x28] sm:$0xff]  }
 0x7fb   : > { %v2301_v44 = vcombine.low %v2277_v38, %v2293_v40  ;;  %v2302_v45 = vcombine.high %v2277_v38, %v2293_v40  ;;  %v2317_v46 = vcombine.low %v2284_v39, %v2300_v43  ;;  %v2318_v48 = vcombine.high %v2284_v39, %v2300_v43 }
 0x7fd   : > { %v2309_v50 = vrot.slane %v2301_v44, %v3292_v47  ;;  %v2316_v51 = vrot.slane %v2302_v45, %v3292_v47  ;;  %v2325_v52 = vrot.slane %v2317_v46, %v3292_v47  ;;  %v2332_v53 = vrot.slane %v2318_v48, %v3292_v47  ;;  %v2873_v44 = vld [vmem:[%s3602_s6] ss:$0 sm:$0xff] }
 0x7fe   : > { %v2874_v46 = vld [vmem:[%s3603_s7] ss:$0 sm:$0xff] }
 0x7ff   : > { %v2337_v54 = vcombine.low %v2309_v50, %v2316_v51  ;;  %v2867_v55 = vcombine.high %v2309_v50, %v2316_v51  ;;  %v2353_v56 = vcombine.low %v2325_v52, %v2332_v53  ;;  %v2868_v57 = vcombine.high %v2325_v52, %v2332_v53  ;;  %v3067_v51 = vld [vmem:[%s3606_s10 + $0x30] sm:$0xff]   ;;  %v3068_v52 = vld [vmem:[%s3606_s10 + $0x38] sm:$0xff]   ;;  %v2875_v53 = vld [vmem:[%s3605_s9] ss:$0 sm:$0xff] }
 0x801   : > { %v2344_v59 = vrot.slane %v2337_v54, %v3286_v37  ;;  %v2352_v60 = vrot.slane %v2867_v55, %v3286_v37  ;;  %v2360_v61 = vrot.slane %v2353_v56, %v3286_v37  ;;  %v2368_v62 = vrot.slane %v2868_v57, %v3286_v37 }
 0x803   : > { %v2370_v63 = vcombine.high %v2344_v59, %v2352_v60  ;;  %v2386_v0 = vcombine.high %v2360_v61, %v2368_v62  ;;  %v2369_v1 = vcombine.low %v2344_v59, %v2352_v60  ;;  %v2385_v2 = vcombine.low %v2360_v61, %v2368_v62 }
 0x805   : > { %v2384_v3 = vrot.slane %v2370_v63, %v3292_v47  ;;  %v2400_v18 = vrot.slane %v2386_v0, %v3292_v47  ;;  %v2377_v4 = vrot.slane %v2369_v1, %v3292_v47  ;;  %v2393_v24 = vrot.slane %v2385_v2, %v3292_v47 }
 0x807   : > { %v2403_v25 = vcombine.low %v2384_v3, %v2400_v18  ;;  %v2402_v34 = vcombine.high %v2377_v4, %v2393_v24  ;;  %v2401_v20 = vcombine.low %v2377_v4, %v2393_v24  ;;  %v2404_v37 = vcombine.high %v2384_v3, %v2400_v18  ;;  %v2732_v3 = vld [vmem:[%s3446_s25] sm:$0xf] (%p3222_p4)  ;;  %v2734_v18 = vld [vmem:[%s3446_s25 + $0x4] sm:$0xf] (%p3222_p4)  ;;  %v2736_v4 = vld [vmem:[%s3446_s25 + $0x8] sm:$0xf] (%p3222_p4) }
 0x808   : > { %v2738_v24 = vld [vmem:[%s3446_s25 + $0xc] sm:$0xf] (%p3222_p4) }
 0x809   : > { %2410 = vrot.lane.b32.xlu1 %v2403_v25, %s3124_s27  ;;  %2406 = vrot.lane.b32.xlu0 %v2402_v34, %s3125_s30  ;;  %s2889_s27 = sshll.u32 (%p3222_p4), %s3210_s28, 2 }
 0x80a   : > { %s2716_s18 = scalar_lea.vmem (%p3222_p4), %s3609_s13, %s2889_s27 }
 0x80b   : > { %2733 = vst [vmem:[%s2716_s18] sm:$0xf] (%p3222_p4), %v2732_v3  ;;  %2735 = vst [vmem:[%s2716_s18 + $0x8] sm:$0xf] (%p3222_p4), %v2734_v18 }
 0x80c   : > { %2737 = vst [vmem:[%s2716_s18 + $0x10] sm:$0xf] (%p3222_p4), %v2736_v4  ;;  %2739 = vst [vmem:[%s2716_s18 + $0x18] sm:$0xf] (%p3222_p4), %v2738_v24 }
 0x80d   : > { %2414 = vrot.lane.b32.xlu1 %v2404_v37, %s3126_s14 }
 0x87b   : > { %v2411_v6 = vpop.permute.xlu1 %2410  ;;  %v2407_v23 = vpop.permute.xlu0 %2406 }
 0x87c   : > { %v2417_v26 = vsel %vm1294_vm3, %v2401_v20, %v2407_v23 }
 0x87d   : > { %v2419_v42 = vsel %vm2418_vm8, %v2417_v26, %v2411_v6 }
 0x87f   : > { %v2415_v7 = vpop.permute.xlu1 %2414 }
 0x880   : > { %v2421_v47 = vsel %vm2420_vm9, %v2419_v42, %v2415_v7 }
 0x881   : > { %v2422_v41 = vpack.c.bf16 %v2421_v47, %v2421_v47 }
 0x883   : > { %2987 = vmatmul.mubr.msk.bf16.vlgmr.msra.gmra.mrb[12].mxu0 %vm447_vm0, %v2422_v41 }
 0x884   : > { %3014 = vmatprep.mubr.msk.bf16.mxu0 %vm3115_vm1, %v3114_v8  ;;  %2999 = vmatpush3.bf16.msra.mxu0 %v3061_v28 }
 0x885   : > { %3000 = vmatprep.subr.bf16.mxu0 %v3114_v8 }
 0x888   : > { %3001 = vmatpush3.bf16.msra.mxu0 %v3062_v29 }
 0x889   : > { %3002 = vmatprep.subr.bf16.mxu0 %v3114_v8 }
 0x88c   : > { %3003 = vmatpush3.bf16.msra.mxu0 %v3063_v31 }
 0x88d   : > { %3004 = vmatprep.subr.bf16.mxu0 %v3114_v8 }
 0x890   : > { %3005 = vmatpush3.bf16.msra.mxu0 %v3064_v32 }
 0x891   : > { %3006 = vmatprep.subr.bf16.mxu0 %v3114_v8 }
 0x894   : > { %3007 = vmatpush3.bf16.msra.mxu0 %v3065_v35 }
 0x895   : > { %3008 = vmatprep.subr.bf16.mxu0 %v3114_v8 }
 0x898   : > { %3009 = vmatpush3.bf16.msra.mxu0 %v3066_v36 }
 0x899   : > { %3010 = vmatprep.subr.bf16.mxu0 %v3114_v8 }
 0x89c   : > { %3011 = vmatpush3.bf16.msra.mxu0 %v3067_v51 }
 0x89d   : > { %3012 = vmatprep.subr.bf16.mxu0 %v3114_v8  ;;  %v2879_v8 = vld [vmem:[%s3607_s11] ss:$0 sm:$0xff] }
 0x8a0   : > { %3013 = vmatpush3.bf16.msra.mxu0 %v3068_v52 }
 0x956   : > { %v2483_v10 = vpop.f32.mrb[12].mxu0 }
 0x957   : > { %v2484_v5 = vadd.f32 %v2869_v9, %v2483_v10  ;;  %v2988_v11 = vpop.f32.mrb[13].mxu0 }
 0x958   : > { %v2486_v12 = vpop.f32.mrb[14].mxu0 }
 0x959   : > { %v3512_v14 = vadd.f32 %v3089_v13, %v2484_v5  ;;  %v2989_v15 = vpop.f32.mrb[15].mxu0 }
 0x95b   : > { %v2492_v16 = vsel %vm447_vm0, %v3512_v14, 0.0 }
 0x95c   : > { %2493 = vadd.xlane.f32.xlu1 %v2492_v16 }
 0x9e9   : > { %v2494_v17 = vpop.xlane.xlu1 %2493 }
 0x9ea   : > { %v2495_v19 = vmul.f32 0.03125, %v2494_v17 }
 0x9ec   : > { %v2496_v21 = vsub.f32 %v3512_v14, %v2495_v19 }
 0x9ee   : > { %v2497_v22 = vmul.f32 %v2496_v21, %v2496_v21 }
 0x9f0   : > { %v2498_v30 = vsel %vm447_vm0, %v2497_v22, 0.0 }
 0x9f1   : > { %2499 = vadd.xlane.f32.xlu0 %v2498_v30 }
 0xa7e   : > { %v2500_v38 = vpop.xlane.xlu0 %2499 }
 0xa7f   : > { %v2501_v39 = vmul.f32 0.03125, %v2500_v38 }
 0xa81   : > { %v2502_v40 = vadd.f32 1e-05, %v2501_v39 }
 0xa83   : > { %3087 = vrsqrt.f32 %v2502_v40 }
 0xa8d   : > { %v3088_v43 = vpop.eup %3087 }
 0xa8e   : > { %v2504_v45 = vmul.f32 %v3088_v43, %v2496_v21 }
 0xa90   : > { %v2511_v48 = vmul.f32 %v2873_v44, %v2504_v45 }
 0xa92   : > { %v2518_v49 = vadd.f32 %v2874_v46, %v2511_v48 }
 0xa94   : > { %v2519_v50 = vpack.c.bf16 %v2518_v49, %v2518_v49 }
 0xa96   : > { %2995 = vmatmul.mubr.msk.bf16.vlgmr.msra.gmra.mrb[24].mxu1 %vm447_vm0, %v2519_v50 }
 0xb69   : > { %v2580_v54 = vpop.f32.mrb[24].mxu1 }
 0xb6a   : > { %v2581_v55 = vadd.f32 %v2875_v53, %v2580_v54  ;;  %v2996_v56 = vpop.f32.mrb[25].mxu1 }
 0xb6b   : > { %v2583_v57 = vpop.f32.mrb[26].mxu1 }
 0xb6c   : > { %v2586_v58 = vmax.f32 %v2581_v55, 0.0  ;;  %v2997_v59 = vpop.f32.mrb[27].mxu1 }
 0xb6e   : > { %v2587_v60 = vpack.c.bf16 %v2586_v58, %v2586_v58 }
 0xb70   : > { %3015 = vmatmul.mubr.bf16.vlgmr.msra.gmra.mrb[16].mxu0 %v2587_v60 }
 0xc42   : > { %2714 = sbr.rel (!%p3222_p4) target bundleno = 3145 (0xc49), region = 76 }
 0xc43   : > { %v2693_v61 = vpop.f32.mrb[16].mxu0 }
 0xc44   : > { %v2694_v62 = vadd.f32 %v2879_v8, %v2693_v61  ;;  %v3016_v63 = vpop.f32.mrb[17].mxu0 }
 0xc45   : > { %v2696_v0 = vpop.f32.mrb[18].mxu0 }
 0xc46   : > { %v2699_v1 = vadd.f32 %v2694_v62, %v3512_v14  ;;  %v3017_v2 = vpop.f32.mrb[19].mxu0 }
 0xc48   : > { %2700 = vst.msk [vmem:[%s442_s24] sm:$0xff] %vm447_vm0, %v2699_v1 }
 0xc49 PF: > { %p21_p8 = scmp.ge.s32.totalorder %s3212_s29, 4   ;;  %s3613_s25 = smov %s3108_s26 }
 0xc4a   : > { %s3614_s26 = smov %s3220_s15  ;;  %s3615_s27 = smov %s3212_s29 }
 0xc4b   :  { %23 = sbr.rel (!%p21_p8) target bundleno = 2 (0x2), region = 151 }

</bundles_post_ra>
